<compile_context>
chip_gen: v5e
topology: v5e:2x2
jax: 0.10.0
libtpu: 0.0.40
codegen_flags: <defaults>
</compile_context>

<pallas_src>
import functools

import jax
import jax.numpy as jnp
from jax.experimental import pallas as pl
from jax.experimental.pallas import tpu as pltpu

LANE = 128


def _round_up(x, m):
    return (x + m - 1) // m * m


# ---------------------------------------------------------------------------
# Kernel 1: dilated conv over one padded NHWC image + fused bias and
#           per-image BN partial statistics (sum, sum of squares).
# ---------------------------------------------------------------------------
def _conv_stats_kernel(x_ref, w_ref, b_ref, y_ref, stat_ref, *,
                       K, dil, Hout, Wout, Cin):
    # x_ref   : (1, Hp, Wp, Cin)     compute dtype (f32 or bf16)
    # w_ref   : (K*K, Cin, Cp)       compute dtype (resident across grid steps)
    # b_ref   : (1, Cp)              f32
    # y_ref   : (1, Hout*Wout, Cp)   compute dtype
    # stat_ref: (1, 2, Cp)           f32 [sum, sum_sq] over this image
    HW = Hout * Wout
    Cp = b_ref.shape[1]

    acc = jnp.zeros((HW, Cp), jnp.float32)
    for kh in range(K):          # static tap loop: K*K accumulated MXU matmuls
        for kw in range(K):
            xs = x_ref[0, kh * dil:kh * dil + Hout, kw * dil:kw * dil + Wout, :]
            xs = xs.reshape(HW, Cin)
            acc = acc + jnp.dot(xs, w_ref[kh * K + kw],
                                preferred_element_type=jnp.float32)

    y = acc + b_ref[...]                               # (HW, Cp) f32
    y_ref[0] = y.astype(y_ref.dtype)
    stat_ref[0, 0:1, :] = jnp.sum(y, axis=0, keepdims=True)
    stat_ref[0, 1:2, :] = jnp.sum(y * y, axis=0, keepdims=True)


def _conv_with_stats(x_pad, w_taps, bias, *, K, dil, Hout, Wout, out_dtype):
    N, Hp, Wp, Cin = x_pad.shape
    KK, _, Cp = w_taps.shape
    HW = Hout * Wout
    kernel = functools.partial(_conv_stats_kernel, K=K, dil=dil,
                               Hout=Hout, Wout=Wout, Cin=Cin)
    return pl.pallas_call(
        kernel,
        out_shape=(jax.ShapeDtypeStruct((N, HW, Cp), out_dtype),
                   jax.ShapeDtypeStruct((N, 2, Cp), jnp.float32)),
        grid_spec=pltpu.PrefetchScalarGridSpec(
            num_scalar_prefetch=0,
            grid=(N,),
            in_specs=[
                pl.BlockSpec((1, Hp, Wp, Cin), lambda n: (n, 0, 0, 0)),
                pl.BlockSpec((KK, Cin, Cp), lambda n: (0, 0, 0)),
                pl.BlockSpec((1, Cp), lambda n: (0, 0)),
            ],
            out_specs=[
                pl.BlockSpec((1, HW, Cp), lambda n: (n, 0, 0)),
                pl.BlockSpec((1, 2, Cp), lambda n: (n, 0, 0)),
            ],
        ),
        compiler_params=pltpu.CompilerParams(
            dimension_semantics=("parallel",)),
    )(x_pad, w_taps, bias)


# ---------------------------------------------------------------------------
# Kernel 2: tiled normalize + affine + ReLU, storing channel-major (NCHW rows)
#           directly (in-kernel transpose -> no XLA transpose afterwards).
# ---------------------------------------------------------------------------
def _bn_relu_nchw_kernel(y_ref, scale_ref, shift_ref, o_ref, *, cout, apply_relu):
    # y_ref : (1, Tsp, Cp)   scale/shift: (1, Cp) f32   o_ref: (1, cout, Tsp) f32
    y = y_ref[0].astype(jnp.float32)
    out = y * scale_ref[...] + shift_ref[...]
    if apply_relu:
        out = jnp.maximum(out, 0.0)
    o_ref[0] = out.T[:cout, :]                         # (cout, Tsp), lane-dense store


def _bn_relu_to_nchw(conv_rows, scale, shift, *, Cout, apply_relu):
    N, HW, Cp = conv_rows.shape
    # largest lane-friendly spatial tile that exactly divides HW (no masked tail)
    tsp = HW
    for cand in (2048, 1024, 512, 256, 128):
        if HW % cand == 0:
            tsp = cand
            break
    kernel = functools.partial(_bn_relu_nchw_kernel, cout=Cout,
                               apply_relu=apply_relu)
    return pl.pallas_call(
        kernel,
        out_shape=jax.ShapeDtypeStruct((N, Cout, HW), jnp.float32),
        grid_spec=pltpu.PrefetchScalarGridSpec(
            num_scalar_prefetch=0,
            grid=(N, HW // tsp),
            in_specs=[
                pl.BlockSpec((1, tsp, Cp), lambda n, j: (n, j, 0)),
                pl.BlockSpec((1, Cp), lambda n, j: (0, 0)),
                pl.BlockSpec((1, Cp), lambda n, j: (0, 0)),
            ],
            out_specs=pl.BlockSpec((1, Cout, tsp), lambda n, j: (n, 0, j)),
        ),
        compiler_params=pltpu.CompilerParams(
            dimension_semantics=("parallel", "parallel")),
    )(conv_rows, scale, shift)


# ---------------------------------------------------------------------------
# BlockAtrous forward.
# ---------------------------------------------------------------------------
def block_atrous_forward(x, params, *, kernel_size=3, atrous=1, stride=1,
                         Relu=None, normal=None, eps=1e-5,
                         compute_dtype=jnp.float32):
    """x: NCHW float32.  Returns NCHW float32."""
    # TODO(synk): stride > 1 (strided window slicing inside the kernel) not implemented.
    assert stride == 1, "only stride=1 supported"
    N, Cin, H, W = x.shape
    w, b, gamma, beta = params["w"], params["b"], params["gamma"], params["beta"]
    Cout = w.shape[0]

    if kernel_size == 1:
        pad, dil, K = 0, 1, 1
    elif normal is not None:
        pad, dil, K = kernel_size // 2, 1, kernel_size
    else:
        pad, dil, K = atrous, atrous, kernel_size

    Hout = H + 2 * pad - dil * (K - 1)
    Wout = W + 2 * pad - dil * (K - 1)
    HW = Hout * Wout
    Cp = _round_up(Cout, LANE)

    # NCHW -> NHWC + spatial zero pad (XLA fuses transpose+pad into one pass).
    x_pad = jnp.pad(x.transpose(0, 2, 3, 1),
                    ((0, 0), (pad, pad), (pad, pad), (0, 0))).astype(compute_dtype)

    # Weights OIHW -> (K*K taps, Cin, Cp) with lane-padded output channels.
    w_taps = jnp.transpose(w, (2, 3, 1, 0)).reshape(K * K, Cin, Cout)
    w_taps = jnp.pad(w_taps, ((0, 0), (0, 0), (0, Cp - Cout))).astype(compute_dtype)
    b_pad = jnp.pad(b, (0, Cp - Cout)).astype(jnp.float32).reshape(1, Cp)

    conv_rows, stats = _conv_with_stats(
        x_pad, w_taps, b_pad, K=K, dil=dil, Hout=Hout, Wout=Wout,
        out_dtype=compute_dtype)

    # Finalize BatchNorm batch statistics (tiny O(Cout) math in f32).
    cnt = jnp.float32(N * HW)
    s = jnp.sum(stats, axis=0)                                   # (2, Cp)
    mean = s[0] / cnt
    var = jnp.maximum(s[1] / cnt - mean * mean, 0.0)             # guarded single-pass var
    inv = jax.lax.rsqrt(var + eps)
    gamma_p = jnp.pad(gamma, (0, Cp - Cout)).astype(jnp.float32)
    beta_p = jnp.pad(beta, (0, Cp - Cout)).astype(jnp.float32)
    scale = (gamma_p * inv).reshape(1, Cp)
    shift = (beta_p - mean * gamma_p * inv).reshape(1, Cp)

    # ReLU is applied exactly when Relu is None (matches the PyTorch module).
    out = _bn_relu_to_nchw(conv_rows, scale, shift, Cout=Cout,
                           apply_relu=(Relu is None))
    return out.reshape(N, Cout, Hout, Wout)                      # free bitcast, already NCHW


def init_params(key, in_plane, plane, kernel_size):
    kw_, kb_ = jax.random.split(key)
    fan_in = in_plane * kernel_size * kernel_size
    bound = 1.0 / jnp.sqrt(fan_in)
    w = jax.random.uniform(kw_, (plane, in_plane, kernel_size, kernel_size),
                           jnp.float32, -bound, bound)
    b = jax.random.uniform(kb_, (plane,), jnp.float32, -bound, bound)
    gamma = jnp.ones((plane,), jnp.float32)   # PyTorch BN default init
    beta = jnp.zeros((plane,), jnp.float32)
    return {"w": w, "b": b, "gamma": gamma, "beta": beta}


def _reference_forward(x, params, *, atrous, Relu=None):
    """Pure-JAX reference (lax conv + batch-stat BN + ReLU) for validation."""
    w, b, gamma, beta = params["w"], params["b"], params["gamma"], params["beta"]
    y = jax.lax.conv_general_dilated(
        x, w, window_strides=(1, 1),
        padding=[(atrous, atrous), (atrous, atrous)],
        rhs_dilation=(atrous, atrous),
        dimension_numbers=("NCHW", "OIHW", "NCHW"))
    y = y + b[None, :, None, None]
    mean = jnp.mean(y, axis=(0, 2, 3), keepdims=True)
    var = jnp.mean((y - mean) ** 2, axis=(0, 2, 3), keepdims=True)
    out = (y - mean) * jax.lax.rsqrt(var + 1e-5)
    out = out * gamma[None, :, None, None] + beta[None, :, None, None]
    if Relu is None:
        out = jnp.maximum(out, 0.0)
    return out


if __name__ == "__main__":
    key = jax.random.PRNGKey(0)
    k_x, k_p = jax.random.split(key)

    N, Cin, H, W = 2, 4, 16, 16
    Cout, Ksize, atrous = 8, 3, 2

    x = jax.random.normal(k_x, (N, Cin, H, W), jnp.float32)
    params = init_params(k_p, Cin, Cout, Ksize)
    ref = _reference_forward(x, params, atrous=atrous, Relu=None)

    # f32 path: strict check.
    out = block_atrous_forward(x, params, kernel_size=Ksize, atrous=atrous,
                               stride=1, Relu=None, normal=None)
    out = jax.block_until_ready(out)
    assert out.shape == (N, Cout, H, W), out.shape
    assert jnp.allclose(out, ref, rtol=1e-4, atol=1e-4), \
        float(jnp.max(jnp.abs(out - ref)))

    # bf16 MXU-feed path (recommended on v6e/v7x): loose check.
    out_bf16 = block_atrous_forward(x, params, kernel_size=Ksize, atrous=atrous,
                                    stride=1, Relu=None, normal=None,
                                    compute_dtype=jnp.bfloat16)
    out_bf16 = jax.block_until_ready(out_bf16)
    assert out_bf16.shape == (N, Cout, H, W), out_bf16.shape
    assert jnp.allclose(out_bf16, ref, rtol=0.1, atol=0.15), \
        float(jnp.max(jnp.abs(out_bf16 - ref)))

    print("KERNEL_OK")
</pallas_src>

<mosaic_0001>
module attributes {stable_mosaic.version = 11 : i64} {
  func.func @_conv_stats_kernel(%arg0: i32, %arg1: memref<1x20x20x4xf32, #tpu.memory_space<vmem>>, %arg2: memref<9x4x128xf32, #tpu.memory_space<vmem>>, %arg3: memref<1x128xf32, #tpu.memory_space<vmem>>, %arg4: memref<1x256x128xf32, #tpu.memory_space<vmem>>, %arg5: memref<1x2x128xf32, #tpu.memory_space<vmem>>) attributes {dimension_semantics = [#tpu.dimension_semantics<parallel>], iteration_bounds = array<i64: 2>, scalar_prefetch = 0 : i64, scratch_operands = 0 : i64, tpu.core_type = #tpu.core_type<tc>, window_params = [{transform_indices = @transform_0, window_bounds = array<i64: 1, 20, 20, 4>}, {pipeline_mode = #tpu.pipeline_mode<synchronous>, transform_indices = @transform_1, window_bounds = array<i64: 9, 4, 128>}, {pipeline_mode = #tpu.pipeline_mode<synchronous>, transform_indices = @transform_2, window_bounds = array<i64: 1, 128>}, {transform_indices = @transform_3, window_bounds = array<i64: 1, 256, 128>}, {transform_indices = @transform_4, window_bounds = array<i64: 1, 2, 128>}]} {
    %cst = arith.constant 0.000000e+00 : f32
    %0 = vector.broadcast %cst : f32 to vector<256x128xf32>
    %c0 = arith.constant 0 : index
    %c0_0 = arith.constant 0 : index
    %c0_1 = arith.constant 0 : index
    %c0_2 = arith.constant 0 : index
    %1 = vector.load %arg1[%c0, %c0_0, %c0_1, %c0_2] : memref<1x20x20x4xf32, #tpu.memory_space<vmem>>, vector<1x16x16x4xf32>
    %2 = vector.shape_cast %1 : vector<1x16x16x4xf32> to vector<16x16x4xf32>
    %3 = vector.shape_cast %2 : vector<16x16x4xf32> to vector<256x4xf32>
    %c0_3 = arith.constant 0 : index
    %c0_4 = arith.constant 0 : index
    %c0_5 = arith.constant 0 : index
    %4 = vector.load %arg2[%c0_3, %c0_4, %c0_5] : memref<9x4x128xf32, #tpu.memory_space<vmem>>, vector<1x4x128xf32>
    %5 = vector.shape_cast %4 : vector<1x4x128xf32> to vector<4x128xf32>
    %cst_6 = arith.constant dense<0.000000e+00> : vector<256x128xf32>
    %6 = tpu.matmul %3, %5, %cst_6 {dimension_numbers = #tpu.dot_dimension_numbers<[1], [0], [0], [1], [0, 0, 1, 1], [], []>} : vector<256x4xf32>, vector<4x128xf32>, vector<256x128xf32> -> vector<256x128xf32>
    %7 = arith.addf %0, %6 : vector<256x128xf32>
    %c0_7 = arith.constant 0 : index
    %c0_8 = arith.constant 0 : index
    %c2 = arith.constant 2 : index
    %c0_9 = arith.constant 0 : index
    %8 = vector.load %arg1[%c0_7, %c0_8, %c2, %c0_9] : memref<1x20x20x4xf32, #tpu.memory_space<vmem>>, vector<1x16x16x4xf32>
    %9 = vector.shape_cast %8 : vector<1x16x16x4xf32> to vector<16x16x4xf32>
    %10 = vector.shape_cast %9 : vector<16x16x4xf32> to vector<256x4xf32>
    %c1 = arith.constant 1 : index
    %c0_10 = arith.constant 0 : index
    %c0_11 = arith.constant 0 : index
    %11 = vector.load %arg2[%c1, %c0_10, %c0_11] : memref<9x4x128xf32, #tpu.memory_space<vmem>>, vector<1x4x128xf32>
    %12 = vector.shape_cast %11 : vector<1x4x128xf32> to vector<4x128xf32>
    %cst_12 = arith.constant dense<0.000000e+00> : vector<256x128xf32>
    %13 = tpu.matmul %10, %12, %cst_12 {dimension_numbers = #tpu.dot_dimension_numbers<[1], [0], [0], [1], [0, 0, 1, 1], [], []>} : vector<256x4xf32>, vector<4x128xf32>, vector<256x128xf32> -> vector<256x128xf32>
    %14 = arith.addf %7, %13 : vector<256x128xf32>
    %c0_13 = arith.constant 0 : index
    %c0_14 = arith.constant 0 : index
    %c4 = arith.constant 4 : index
    %c0_15 = arith.constant 0 : index
    %15 = vector.load %arg1[%c0_13, %c0_14, %c4, %c0_15] : memref<1x20x20x4xf32, #tpu.memory_space<vmem>>, vector<1x16x16x4xf32>
    %16 = vector.shape_cast %15 : vector<1x16x16x4xf32> to vector<16x16x4xf32>
    %17 = vector.shape_cast %16 : vector<16x16x4xf32> to vector<256x4xf32>
    %c2_16 = arith.constant 2 : index
    %c0_17 = arith.constant 0 : index
    %c0_18 = arith.constant 0 : index
    %18 = vector.load %arg2[%c2_16, %c0_17, %c0_18] : memref<9x4x128xf32, #tpu.memory_space<vmem>>, vector<1x4x128xf32>
    %19 = vector.shape_cast %18 : vector<1x4x128xf32> to vector<4x128xf32>
    %cst_19 = arith.constant dense<0.000000e+00> : vector<256x128xf32>
    %20 = tpu.matmul %17, %19, %cst_19 {dimension_numbers = #tpu.dot_dimension_numbers<[1], [0], [0], [1], [0, 0, 1, 1], [], []>} : vector<256x4xf32>, vector<4x128xf32>, vector<256x128xf32> -> vector<256x128xf32>
    %21 = arith.addf %14, %20 : vector<256x128xf32>
    %c0_20 = arith.constant 0 : index
    %c2_21 = arith.constant 2 : index
    %c0_22 = arith.constant 0 : index
    %c0_23 = arith.constant 0 : index
    %22 = vector.load %arg1[%c0_20, %c2_21, %c0_22, %c0_23] : memref<1x20x20x4xf32, #tpu.memory_space<vmem>>, vector<1x16x16x4xf32>
    %23 = vector.shape_cast %22 : vector<1x16x16x4xf32> to vector<16x16x4xf32>
    %24 = vector.shape_cast %23 : vector<16x16x4xf32> to vector<256x4xf32>
    %c3 = arith.constant 3 : index
    %c0_24 = arith.constant 0 : index
    %c0_25 = arith.constant 0 : index
    %25 = vector.load %arg2[%c3, %c0_24, %c0_25] : memref<9x4x128xf32, #tpu.memory_space<vmem>>, vector<1x4x128xf32>
    %26 = vector.shape_cast %25 : vector<1x4x128xf32> to vector<4x128xf32>
    %cst_26 = arith.constant dense<0.000000e+00> : vector<256x128xf32>
    %27 = tpu.matmul %24, %26, %cst_26 {dimension_numbers = #tpu.dot_dimension_numbers<[1], [0], [0], [1], [0, 0, 1, 1], [], []>} : vector<256x4xf32>, vector<4x128xf32>, vector<256x128xf32> -> vector<256x128xf32>
    %28 = arith.addf %21, %27 : vector<256x128xf32>
    %c0_27 = arith.constant 0 : index
    %c2_28 = arith.constant 2 : index
    %c2_29 = arith.constant 2 : index
    %c0_30 = arith.constant 0 : index
    %29 = vector.load %arg1[%c0_27, %c2_28, %c2_29, %c0_30] : memref<1x20x20x4xf32, #tpu.memory_space<vmem>>, vector<1x16x16x4xf32>
    %30 = vector.shape_cast %29 : vector<1x16x16x4xf32> to vector<16x16x4xf32>
    %31 = vector.shape_cast %30 : vector<16x16x4xf32> to vector<256x4xf32>
    %c4_31 = arith.constant 4 : index
    %c0_32 = arith.constant 0 : index
    %c0_33 = arith.constant 0 : index
    %32 = vector.load %arg2[%c4_31, %c0_32, %c0_33] : memref<9x4x128xf32, #tpu.memory_space<vmem>>, vector<1x4x128xf32>
    %33 = vector.shape_cast %32 : vector<1x4x128xf32> to vector<4x128xf32>
    %cst_34 = arith.constant dense<0.000000e+00> : vector<256x128xf32>
    %34 = tpu.matmul %31, %33, %cst_34 {dimension_numbers = #tpu.dot_dimension_numbers<[1], [0], [0], [1], [0, 0, 1, 1], [], []>} : vector<256x4xf32>, vector<4x128xf32>, vector<256x128xf32> -> vector<256x128xf32>
    %35 = arith.addf %28, %34 : vector<256x128xf32>
    %c0_35 = arith.constant 0 : index
    %c2_36 = arith.constant 2 : index
    %c4_37 = arith.constant 4 : index
    %c0_38 = arith.constant 0 : index
    %36 = vector.load %arg1[%c0_35, %c2_36, %c4_37, %c0_38] : memref<1x20x20x4xf32, #tpu.memory_space<vmem>>, vector<1x16x16x4xf32>
    %37 = vector.shape_cast %36 : vector<1x16x16x4xf32> to vector<16x16x4xf32>
    %38 = vector.shape_cast %37 : vector<16x16x4xf32> to vector<256x4xf32>
    %c5 = arith.constant 5 : index
    %c0_39 = arith.constant 0 : index
    %c0_40 = arith.constant 0 : index
    %39 = vector.load %arg2[%c5, %c0_39, %c0_40] : memref<9x4x128xf32, #tpu.memory_space<vmem>>, vector<1x4x128xf32>
    %40 = vector.shape_cast %39 : vector<1x4x128xf32> to vector<4x128xf32>
    %cst_41 = arith.constant dense<0.000000e+00> : vector<256x128xf32>
    %41 = tpu.matmul %38, %40, %cst_41 {dimension_numbers = #tpu.dot_dimension_numbers<[1], [0], [0], [1], [0, 0, 1, 1], [], []>} : vector<256x4xf32>, vector<4x128xf32>, vector<256x128xf32> -> vector<256x128xf32>
    %42 = arith.addf %35, %41 : vector<256x128xf32>
    %c0_42 = arith.constant 0 : index
    %c4_43 = arith.constant 4 : index
    %c0_44 = arith.constant 0 : index
    %c0_45 = arith.constant 0 : index
    %43 = vector.load %arg1[%c0_42, %c4_43, %c0_44, %c0_45] : memref<1x20x20x4xf32, #tpu.memory_space<vmem>>, vector<1x16x16x4xf32>
    %44 = vector.shape_cast %43 : vector<1x16x16x4xf32> to vector<16x16x4xf32>
    %45 = vector.shape_cast %44 : vector<16x16x4xf32> to vector<256x4xf32>
    %c6 = arith.constant 6 : index
    %c0_46 = arith.constant 0 : index
    %c0_47 = arith.constant 0 : index
    %46 = vector.load %arg2[%c6, %c0_46, %c0_47] : memref<9x4x128xf32, #tpu.memory_space<vmem>>, vector<1x4x128xf32>
    %47 = vector.shape_cast %46 : vector<1x4x128xf32> to vector<4x128xf32>
    %cst_48 = arith.constant dense<0.000000e+00> : vector<256x128xf32>
    %48 = tpu.matmul %45, %47, %cst_48 {dimension_numbers = #tpu.dot_dimension_numbers<[1], [0], [0], [1], [0, 0, 1, 1], [], []>} : vector<256x4xf32>, vector<4x128xf32>, vector<256x128xf32> -> vector<256x128xf32>
    %49 = arith.addf %42, %48 : vector<256x128xf32>
    %c0_49 = arith.constant 0 : index
    %c4_50 = arith.constant 4 : index
    %c2_51 = arith.constant 2 : index
    %c0_52 = arith.constant 0 : index
    %50 = vector.load %arg1[%c0_49, %c4_50, %c2_51, %c0_52] : memref<1x20x20x4xf32, #tpu.memory_space<vmem>>, vector<1x16x16x4xf32>
    %51 = vector.shape_cast %50 : vector<1x16x16x4xf32> to vector<16x16x4xf32>
    %52 = vector.shape_cast %51 : vector<16x16x4xf32> to vector<256x4xf32>
    %c7 = arith.constant 7 : index
    %c0_53 = arith.constant 0 : index
    %c0_54 = arith.constant 0 : index
    %53 = vector.load %arg2[%c7, %c0_53, %c0_54] : memref<9x4x128xf32, #tpu.memory_space<vmem>>, vector<1x4x128xf32>
    %54 = vector.shape_cast %53 : vector<1x4x128xf32> to vector<4x128xf32>
    %cst_55 = arith.constant dense<0.000000e+00> : vector<256x128xf32>
    %55 = tpu.matmul %52, %54, %cst_55 {dimension_numbers = #tpu.dot_dimension_numbers<[1], [0], [0], [1], [0, 0, 1, 1], [], []>} : vector<256x4xf32>, vector<4x128xf32>, vector<256x128xf32> -> vector<256x128xf32>
    %56 = arith.addf %49, %55 : vector<256x128xf32>
    %c0_56 = arith.constant 0 : index
    %c4_57 = arith.constant 4 : index
    %c4_58 = arith.constant 4 : index
    %c0_59 = arith.constant 0 : index
    %57 = vector.load %arg1[%c0_56, %c4_57, %c4_58, %c0_59] : memref<1x20x20x4xf32, #tpu.memory_space<vmem>>, vector<1x16x16x4xf32>
    %58 = vector.shape_cast %57 : vector<1x16x16x4xf32> to vector<16x16x4xf32>
    %59 = vector.shape_cast %58 : vector<16x16x4xf32> to vector<256x4xf32>
    %c8 = arith.constant 8 : index
    %c0_60 = arith.constant 0 : index
    %c0_61 = arith.constant 0 : index
    %60 = vector.load %arg2[%c8, %c0_60, %c0_61] : memref<9x4x128xf32, #tpu.memory_space<vmem>>, vector<1x4x128xf32>
    %61 = vector.shape_cast %60 : vector<1x4x128xf32> to vector<4x128xf32>
    %cst_62 = arith.constant dense<0.000000e+00> : vector<256x128xf32>
    %62 = tpu.matmul %59, %61, %cst_62 {dimension_numbers = #tpu.dot_dimension_numbers<[1], [0], [0], [1], [0, 0, 1, 1], [], []>} : vector<256x4xf32>, vector<4x128xf32>, vector<256x128xf32> -> vector<256x128xf32>
    %63 = arith.addf %56, %62 : vector<256x128xf32>
    %c0_63 = arith.constant 0 : index
    %c0_64 = arith.constant 0 : index
    %64 = vector.load %arg3[%c0_63, %c0_64] : memref<1x128xf32, #tpu.memory_space<vmem>>, vector<1x128xf32>
    %65 = vector.broadcast %64 : vector<1x128xf32> to vector<256x128xf32>
    %66 = arith.addf %63, %65 : vector<256x128xf32>
    %c0_65 = arith.constant 0 : index
    %c0_66 = arith.constant 0 : index
    %c0_67 = arith.constant 0 : index
    %67 = vector.load %arg4[%c0_65, %c0_66, %c0_67] : memref<1x256x128xf32, #tpu.memory_space<vmem>>, vector<1x256x128xf32>
    %68 = vector.shape_cast %67 : vector<1x256x128xf32> to vector<256x128xf32>
    %69 = vector.shape_cast %66 : vector<256x128xf32> to vector<1x256x128xf32>
    tpu.vector_store %arg4[%c0_65, %c0_66, %c0_67], %69 {strides = array<i32>} : memref<1x256x128xf32, #tpu.memory_space<vmem>>, vector<1x256x128xf32>,
    %cst_68 = arith.constant dense<0.000000e+00> : vector<128xf32>
    %70 = vector.multi_reduction <add>, %66, %cst_68 [0] : vector<256x128xf32> to vector<128xf32>
    %71 = vector.shape_cast %70 : vector<128xf32> to vector<1x128xf32>
    %c0_69 = arith.constant 0 : index
    %c0_70 = arith.constant 0 : index
    %c0_71 = arith.constant 0 : index
    %72 = vector.load %arg5[%c0_69, %c0_70, %c0_71] : memref<1x2x128xf32, #tpu.memory_space<vmem>>, vector<1x1x128xf32>
    %73 = vector.shape_cast %72 : vector<1x1x128xf32> to vector<1x128xf32>
    %74 = vector.shape_cast %71 : vector<1x128xf32> to vector<1x1x128xf32>
    tpu.vector_store %arg5[%c0_69, %c0_70, %c0_71], %74 {strides = array<i32>} : memref<1x2x128xf32, #tpu.memory_space<vmem>>, vector<1x1x128xf32>,
    %75 = arith.mulf %66, %66 : vector<256x128xf32>
    %cst_72 = arith.constant dense<0.000000e+00> : vector<128xf32>
    %76 = vector.multi_reduction <add>, %75, %cst_72 [0] : vector<256x128xf32> to vector<128xf32>
    %77 = vector.shape_cast %76 : vector<128xf32> to vector<1x128xf32>
    %c0_73 = arith.constant 0 : index
    %c1_74 = arith.constant 1 : index
    %c0_75 = arith.constant 0 : index
    %78 = vector.load %arg5[%c0_73, %c1_74, %c0_75] : memref<1x2x128xf32, #tpu.memory_space<vmem>>, vector<1x1x128xf32>
    %79 = vector.shape_cast %78 : vector<1x1x128xf32> to vector<1x128xf32>
    %80 = vector.shape_cast %77 : vector<1x128xf32> to vector<1x1x128xf32>
    tpu.vector_store %arg5[%c0_73, %c1_74, %c0_75], %80 {strides = array<i32>} : memref<1x2x128xf32, #tpu.memory_space<vmem>>, vector<1x1x128xf32>,
    return
  }
  func.func @transform_0(%arg0: i32) -> (i32, i32, i32, i32) {
    %c0_i32 = arith.constant 0 : i32
    %c0_i32_0 = arith.constant 0 : i32
    %c0_i32_1 = arith.constant 0 : i32
    %c0_i32_2 = arith.constant 0 : i32
    return %arg0, %c0_i32, %c0_i32_0, %c0_i32_1 : i32, i32, i32, i32
  }
  func.func @transform_1(%arg0: i32) -> (i32, i32, i32) {
    %c0_i32 = arith.constant 0 : i32
    %c0_i32_0 = arith.constant 0 : i32
    %c0_i32_1 = arith.constant 0 : i32
    %c0_i32_2 = arith.constant 0 : i32
    return %c0_i32, %c0_i32_0, %c0_i32_1 : i32, i32, i32
  }
  func.func @transform_2(%arg0: i32) -> (i32, i32) {
    %c0_i32 = arith.constant 0 : i32
    %c0_i32_0 = arith.constant 0 : i32
    %c0_i32_1 = arith.constant 0 : i32
    return %c0_i32, %c0_i32_0 : i32, i32
  }
  func.func @transform_3(%arg0: i32) -> (i32, i32, i32) {
    %c0_i32 = arith.constant 0 : i32
    %c0_i32_0 = arith.constant 0 : i32
    %c0_i32_1 = arith.constant 0 : i32
    return %arg0, %c0_i32, %c0_i32_0 : i32, i32, i32
  }
  func.func @transform_4(%arg0: i32) -> (i32, i32, i32) {
    %c0_i32 = arith.constant 0 : i32
    %c0_i32_0 = arith.constant 0 : i32
    %c0_i32_1 = arith.constant 0 : i32
    return %arg0, %c0_i32, %c0_i32_0 : i32, i32, i32
  }
}

</mosaic_0001>

<bundles_post_ra>
// kernel: tpu_custom_call.1
= control target key start
LH: loop header
LB: loop body
LE: loop exit
PB: predicated region body
PF: predicated region fallthrough
CT: control target
= control target key end

     0   :  { %10 = vsyncpa [#allocation3], 0  ;;  %s4882_s0 = inlined_call_operand.vmem [shape: f32[2,20,20,4], index: 0, kind: input, shape index: {}]   ;;  %s4883_s1 = inlined_call_operand.vmem [shape: f32[9,4,128], index: 1, kind: input, shape index: {}]   ;;  %s4884_s2 = inlined_call_operand.vmem [shape: f32[1,128], index: 2, kind: input, shape index: {}]   ;;  %s4885_s3 = inlined_call_operand.hbm [shape: f32[2,256,128], index: 3, kind: output, shape index: {0}]   ;;  %s4886_s4 = inlined_call_operand.hbm [shape: f32[2,2,128], index: 4, kind: output, shape index: {1}]  }
   0x1   :  { %12 = vsyncpa [#allocation3 + $0x1], 0 }
   0x2   :  { %13 = vsyncpa [#allocation5], 0 }
   0x3   :  { %15 = vsyncpa [#allocation5 + $0x1], 0  ;;  %s3640_s15 = smov 0   ;;  %s3642_s16 = smov 0  }
   0x4   :  { %s3644_s17 = smov 0   ;;  %s3646_s18 = smov 0  }
   0x5 LB: > { %s3661_s19 = sadd.s32 4294967295, %s3611_s18   ;;  %s2954_s20 = sadd.s32 4294967294, %s3611_s18   ;;  %s3611_s18 = sphi %s3646_s18, %s4996_s18   ;;  %s3607_s17 = sphi %s3644_s17, %s4995_s17   ;;  %s3603_s16 = sphi %s3642_s16, %s4994_s16   ;;  %s3599_s15 = sphi %s3640_s15, %s4993_s15  }
   0x6   : > { %s3665_s21 = sadd.s32 1, %s3611_s18   ;;  %s96_s22 = sadd.s32 1, %s3607_s17 }
   0x7   : > { %s93_s23 = ssub.s32 %s3611_s18, %s3665_s21  ;;  %p106_p0 = scmp.ne.s32.totalorder %s3607_s17, %s3603_s16 }
   0x8   : > { %p94_p1 = scmp.eq.s32.totalorder %s93_s23, 0  ;;  %p107_p2 = scmp.eq.s32.totalorder %s3661_s19, 1 }
   0x9   : > { %p112_p3 = scmp.ne.s32.totalorder %s3603_s16, %s3599_s15  ;;  %p113_p4 = scmp.eq.s32.totalorder %s2954_s20, 1 }
   0xa   : > { %s3676_s24 = scalar_select %p94_p1, %s3607_s17, %s96_s22  }
   0xb   : > { %p3678_p5 = por %p107_p2, %p106_p0  ;;  %p3682_p6 = por %p113_p4, %p112_p3 }
   0xc   : > { %p2957_p7 = scmp.ge.s32.totalorder %s3611_s18, 1  ;;  %p171_p8 = scmp.lt.s32.totalorder %s3611_s18, 3 }
   0xe   : > { %p172_p9 = pnand %p2957_p7, %p171_p8 }
  0x10   : > { %175 = sbr.rel (%p172_p9) target bundleno = 757 (0x2f5), region = 32 }
  0x15   : > { %v2961_v0 = vld [vmem:[%s4883_s1 + $0x4] sm:$0xf]  ;;  %vm371_vm0 = vcmask 1043456   ;;  %p202_p10 = scmp.lt.s32.totalorder %s3661_s19, 1  ;;  %v3028_v1 = vld [vmem:[%s4883_s1 + $0x8] sm:$0xf] }
  0x16   : > { %3466 = vmatpush.msk.msra.mxu1 %vm371_vm0, %v2961_v0  ;;  %3467 = vmatpush.msk.msra.mxu2 %vm371_vm0, %v2961_v0  ;;  %v3094_v2 = vld [vmem:[%s4883_s1 + $0xc] sm:$0xf]  ;;  %v239_v3 = vld [vmem:[%s4883_s1] sm:$0xf]  ;;  %v3160_v4 = vld [vmem:[%s4883_s1 + $0x10] sm:$0xf] }
  0x17   : > { %s203_s9 = scalar_select %p202_p10, %s3661_s19, 1  ;;  %3468 = vmatpush.msk.msra.mxu3 %vm371_vm0, %v2961_v0  ;;  %2962 = vmatpush.msk.msra.mxu0 %vm371_vm0, %v2961_v0  ;;  %vm274_vm1 = vcmask 31744   ;;  %v3292_v25 = vld [vmem:[%s4883_s1 + $0x18] sm:$0xf]  ;;  %v3358_v26 = vld [vmem:[%s4883_s1 + $0x1c] sm:$0xf] }
  0x18   : > { %3029 = vmatpush.msk.msrb.mxu2 %vm371_vm0, %v3028_v1  ;;  %2995 = vmatpush.msk.msrb.mxu1 %vm371_vm0, %v239_v3  ;;  %v3226_v27 = vld [vmem:[%s4883_s1 + $0x14] sm:$0xf]  ;;  %v3424_v32 = vld [vmem:[%s4883_s1 + $0x20] sm:$0xf]  ;;  %s4596_s7 = sand.u32 1, %s3603_s16   ;;  %s3537_s6 = scalar_lea.hbm %s4885_s3, 512 }
  0x19   : > { %3095 = vmatpush.msk.msrb.mxu3 %vm371_vm0, %v3094_v2  ;;  %s3469_s12 = smul.u32 480, %s203_s9  ;;  %3161 = vmatpush.msk.msrb.mxu0 %vm371_vm0, %v3160_v4  ;;  %s2958_s8 = sshll.u32 %s4596_s7, 8 }
  0x1a   : > { %s4614_s11 = scalar_lea.vmem [#allocation2], %s2958_s8  ;;  %s2825_s27 = scalar_lea.sflag [#allocation3], %s4596_s7 }
  0x1b   : > { %s3716_s20 = scalar_lea.vmem %s4882_s0, %s3469_s12  ;;  %s3465_s12 = sshll.u32 %s3661_s19, 8 }
  0x1c   : > { %v3719_v5 = vld [vmem:[%s3716_s20 + $0x62] sm:$0xff]  ;;  %v3736_v9 = vld [vmem:[%s3716_s20 + $0x6a] sm:$0xff]  ;;  %v3753_v13 = vld [vmem:[%s3716_s20 + $0x7a] sm:$0xff]  ;;  %s2842_s22 = sshll.u32 %s4614_s11, 4  ;;  %s2843_s22 = int_to_ptr.vmem [resolvable:$true] %s2842_s22 }
  0x1d   : > { %v3722_v6 = vld [vmem:[%s3716_s20 + $0xc2] sm:$0xff]  ;;  %2971 = vmatmul.msk.f32.vlgmr.msra.gmra.mxu1 %vm274_vm1, %v3719_v5  ;;  %v3739_v10 = vld [vmem:[%s3716_s20 + $0xca] sm:$0xff]  ;;  %v3756_v14 = vld [vmem:[%s3716_s20 + $0xda] sm:$0xff] }
  0x1e   : > { %v3725_v7 = vld [vmem:[%s3716_s20 + $0x122] sm:$0xff]  ;;  %2979 = vmatmul.msk.f32.vlgmr.msra.gmra.mxu2 %vm274_vm1, %v3722_v6  ;;  %v3742_v11 = vld [vmem:[%s3716_s20 + $0x12a] sm:$0xff]  ;;  %v3759_v15 = vld [vmem:[%s3716_s20 + $0x13a] sm:$0xff]  ;;  %3227 = vmatpush.msk.msra.mxu1 %vm371_vm0, %v3226_v27 }
  0x1f   : > { %v240_v8 = vld [vmem:[%s3716_s20 + $0x2] sm:$0xff]  ;;  %2987 = vmatmul.msk.f32.vlgmr.msra.gmra.mxu3 %vm274_vm1, %v3725_v7  ;;  %v241_v12 = vld [vmem:[%s3716_s20 + $0xa] sm:$0xff]  ;;  %v242_v16 = vld [vmem:[%s3716_s20 + $0x1a] sm:$0xff]  ;;  %3293 = vmatpush.msk.msra.mxu2 %vm371_vm0, %v3292_v25 }
  0x20   : > { %2963 = vmatmul.msk.f32.vlgmr.msra.gmra.mxu0 %vm274_vm1, %v240_v8  ;;  %v3770_v17 = vld [vmem:[%s3716_s20 + $0x82] sm:$0xff]  ;;  %v3787_v21 = vld [vmem:[%s3716_s20 + $0x92] sm:$0xff]  ;;  %3359 = vmatpush.msk.msra.mxu3 %vm371_vm0, %v3358_v26  ;;  %v3816_v28 = vld [vmem:[%s3716_s20 + $0x9a] sm:$0xff] }
  0x21   : > { %v3773_v18 = vld [vmem:[%s3716_s20 + $0xe2] sm:$0xff]  ;;  %v3790_v22 = vld [vmem:[%s3716_s20 + $0xf2] sm:$0xff]  ;;  %v3819_v29 = vld [vmem:[%s3716_s20 + $0xfa] sm:$0xff]  ;;  %3425 = vmatpush.msk.msra.mxu0 %vm371_vm0, %v3424_v32 }
  0x22   : > { %v3776_v19 = vld [vmem:[%s3716_s20 + $0x142] sm:$0xff]  ;;  %v3793_v23 = vld [vmem:[%s3716_s20 + $0x152] sm:$0xff]  ;;  %v3822_v30 = vld [vmem:[%s3716_s20 + $0x15a] sm:$0xff] }
  0x23   : > { %v243_v20 = vld [vmem:[%s3716_s20 + $0x22] sm:$0xff]  ;;  %v244_v24 = vld [vmem:[%s3716_s20 + $0x32] sm:$0xff]  ;;  %v245_v31 = vld [vmem:[%s3716_s20 + $0x3a] sm:$0xff] }
  0x24   : > { %v3837_v33 = vld [vmem:[%s3716_s20 + $0xaa] sm:$0xff]  ;;  %v3854_v37 = vld [vmem:[%s3716_s20 + $0xb2] sm:$0xff]  ;;  %v207_v41 = vld [vmem:[%s3716_s20] sm:$0xff] }
  0x25   : > { %2972 = vmatmul.msk.f32.gmra.mxu1 %vm274_vm1, %v3736_v9  ;;  %v3840_v34 = vld [vmem:[%s3716_s20 + $0x10a] sm:$0xff]  ;;  %v3857_v38 = vld [vmem:[%s3716_s20 + $0x112] sm:$0xff]  ;;  %v702_v48 = vld [vmem:[%s3716_s20 + $0x1c] sm:$0xff] }
  0x26   : > { %2980 = vmatmul.msk.f32.gmra.mxu2 %vm274_vm1, %v3739_v10  ;;  %v3843_v35 = vld [vmem:[%s3716_s20 + $0x16a] sm:$0xff]  ;;  %v3860_v39 = vld [vmem:[%s3716_s20 + $0x172] sm:$0xff]  ;;  %v210_v50 = vld [vmem:[%s3716_s20 + $0x20] sm:$0xff] }
  0x27   : > { %2988 = vmatmul.msk.f32.gmra.mxu3 %vm274_vm1, %v3742_v11  ;;  %v246_v36 = vld [vmem:[%s3716_s20 + $0x4a] sm:$0xff]  ;;  %v247_v40 = vld [vmem:[%s3716_s20 + $0x52] sm:$0xff]  ;;  %v3902_v54 = vld [vmem:[%s3716_s20 + $0x60] sm:$0xff] }
  0x28   : > { %2964 = vmatmul.msk.f32.gmra.mxu0 %vm274_vm1, %v241_v12  ;;  %v700_v42 = vld [vmem:[%s3716_s20 + $0x4] sm:$0xff]  ;;  %v3062_v43 = vld [vmem:[%s3716_s20 + $0x30] sm:$0xff]  ;;  %v3063_v46 = vld [vmem:[%s3716_s20 + $0x38] sm:$0xff] }
  0x29   : > { %v208_v44 = vld [vmem:[%s3716_s20 + $0x8] sm:$0xff]  ;;  %v209_v47 = vld [vmem:[%s3716_s20 + $0x18] sm:$0xff]  ;;  %v3065_v52 = vld [vmem:[%s3716_s20 + $0x50] sm:$0xff] }
  0x2a   : > { %v701_v45 = vld [vmem:[%s3716_s20 + $0xc] sm:$0xff]  ;;  %v703_v51 = vld [vmem:[%s3716_s20 + $0x24] sm:$0xff]  ;;  %v3899_v53 = vld [vmem:[%s3716_s20 + $0x34] sm:$0xff] }
  0x2b   : > { %v3064_v49 = vld [vmem:[%s3716_s20 + $0x48] sm:$0xff]  ;;  %v3912_v55 = vld [vmem:[%s3716_s20 + $0x3c] sm:$0xff]  ;;  %v3938_v59 = vld [vmem:[%s3716_s20 + $0x54] sm:$0xff] }
  0x2c   : > { %v3915_v56 = vld [vmem:[%s3716_s20 + $0x68] sm:$0xff]  ;;  %v3928_v58 = vld [vmem:[%s3716_s20 + $0x78] sm:$0xff]  ;;  %v3941_v60 = vld [vmem:[%s3716_s20 + $0x80] sm:$0xff] }
  0x2d   : > { %2973 = vmatmul.msk.f32.gmra.mxu1 %vm274_vm1, %v3753_v13  ;;  %v3925_v57 = vld [vmem:[%s3716_s20 + $0x4c] sm:$0xff]  ;;  %v3953_v62 = vld [vmem:[%s3716_s20 + $0x64] sm:$0xff]  ;;  %v3978_v8 = vld [vmem:[%s3716_s20 + $0x98] sm:$0xff] }
  0x2e   : > { %2981 = vmatmul.msk.f32.gmra.mxu2 %vm274_vm1, %v3756_v14  ;;  %v3956_v63 = vld [vmem:[%s3716_s20 + $0x90] sm:$0xff]  ;;  %4912 = vst [vmem:[#allocation9_spill] sm:$0xff] %v3978_v8 }
  0x2f   : > { %2989 = vmatmul.msk.f32.gmra.mxu3 %vm274_vm1, %v3759_v15  ;;  %v3975_v4 = vld [vmem:[%s3716_s20 + $0x6c] sm:$0xff] }
  0x30   : > { %2965 = vmatmul.msk.f32.gmra.mxu0 %vm274_vm1, %v242_v16  ;;  %v4022_v32 = vld [vmem:[%s3716_s20 + $0xb0] sm:$0xff] }
  0x31   : > { %4916 = vst [vmem:[#allocation13_spill] sm:$0xff] %v4022_v32 }
  0x35   : > { %2974 = vmatmul.msk.f32.gmra.mxu1 %vm274_vm1, %v3770_v17 }
  0x36   : > { %2982 = vmatmul.msk.f32.gmra.mxu2 %vm274_vm1, %v3773_v18 }
  0x37   : > { %2990 = vmatmul.msk.f32.gmra.mxu3 %vm274_vm1, %v3776_v19 }
  0x38   : > { %2966 = vmatmul.msk.f32.gmra.mxu0 %vm274_vm1, %v243_v20 }
  0x3d   : > { %2975 = vmatmul.msk.f32.gmra.mxu1 %vm274_vm1, %v3787_v21 }
  0x3e   : > { %2983 = vmatmul.msk.f32.gmra.mxu2 %vm274_vm1, %v3790_v22 }
  0x3f   : > { %2991 = vmatmul.msk.f32.gmra.mxu3 %vm274_vm1, %v3793_v23 }
  0x40   : > { %2967 = vmatmul.msk.f32.gmra.mxu0 %vm274_vm1, %v244_v24 }
  0x45   : > { %2976 = vmatmul.msk.f32.gmra.mxu1 %vm274_vm1, %v3816_v28 }
  0x46   : > { %2984 = vmatmul.msk.f32.gmra.mxu2 %vm274_vm1, %v3819_v29 }
  0x47   : > { %2992 = vmatmul.msk.f32.gmra.mxu3 %vm274_vm1, %v3822_v30 }
  0x48   : > { %2968 = vmatmul.msk.f32.gmra.mxu0 %vm274_vm1, %v245_v31 }
  0x4d   : > { %2977 = vmatmul.msk.f32.gmra.mxu1 %vm274_vm1, %v3837_v33 }
  0x4e   : > { %2985 = vmatmul.msk.f32.gmra.mxu2 %vm274_vm1, %v3840_v34 }
  0x4f   : > { %2993 = vmatmul.msk.f32.gmra.mxu3 %vm274_vm1, %v3843_v35 }
  0x50   : > { %2969 = vmatmul.msk.f32.gmra.mxu0 %vm274_vm1, %v246_v36 }
  0x55   : > { %2978 = vmatmul.msk.f32.gmra.mxu1 %vm274_vm1, %v3854_v37 }
  0x56   : > { %2986 = vmatmul.msk.f32.gmra.mxu2 %vm274_vm1, %v3857_v38 }
  0x57   : > { %2994 = vmatmul.msk.f32.gmra.mxu3 %vm274_vm1, %v3860_v39 }
  0x58   : > { %2970 = vmatmul.msk.f32.gmra.mxu0 %vm274_vm1, %v247_v40 }
  0x5d   : > { %2996 = vmatmul.msk.f32.vlgmr.msrb.gmra.mxu1 %vm274_vm1, %v207_v41 }
  0x5e   : > { %3030 = vmatmul.msk.f32.vlgmr.msrb.gmra.mxu2 %vm274_vm1, %v700_v42  ;;  %v4041_v42 = vld [vmem:[%s3716_s20 + $0x94] sm:$0xff] }
  0x5f   : > { %3096 = vmatmul.msk.f32.vlgmr.msrb.gmra.mxu3 %vm274_vm1, %v3062_v43  ;;  %4918 = vst [vmem:[#allocation15_spill] sm:$0xff] %v4041_v42 }
  0x60   : > { %3162 = vmatmul.msk.f32.vlgmr.msrb.gmra.mxu0 %vm274_vm1, %v244_v24  ;;  %v4000_v24 = vld [vmem:[%s3716_s20 + $0xa8] sm:$0xff] }
  0x61   : > { %4914 = vst [vmem:[#allocation11_spill] sm:$0xff] %v4000_v24 }
  0x65   : > { %2997 = vmatmul.msk.f32.gmra.mxu1 %vm274_vm1, %v208_v44 }
  0x66   : > { %3031 = vmatmul.msk.f32.gmra.mxu2 %vm274_vm1, %v701_v45 }
  0x67   : > { %3097 = vmatmul.msk.f32.gmra.mxu3 %vm274_vm1, %v3063_v46 }
  0x68   : > { %3163 = vmatmul.msk.f32.gmra.mxu0 %vm274_vm1, %v245_v31  ;;  %v4019_v31 = vld [vmem:[%s3716_s20 + $0x84] sm:$0xff] }
  0x6d   : > { %2998 = vmatmul.msk.f32.gmra.mxu1 %vm274_vm1, %v209_v47  ;;  %v4063_v47 = vld [vmem:[%s3716_s20 + $0x9c] sm:$0xff] }
  0x6e   : > { %3032 = vmatmul.msk.f32.gmra.mxu2 %vm274_vm1, %v702_v48  ;;  %4922 = vst [vmem:[#allocation19_spill] sm:$0xff] %v4063_v47  ;;  %v4066_v48 = vld [vmem:[%s3716_s20 + $0xc8] sm:$0xff] }
  0x6f   : > { %3098 = vmatmul.msk.f32.gmra.mxu3 %vm274_vm1, %v3064_v49 }
  0x70   : > { %3164 = vmatmul.msk.f32.gmra.mxu0 %vm274_vm1, %v246_v36 }
  0x75   : > { %2999 = vmatmul.msk.f32.gmra.mxu1 %vm274_vm1, %v210_v50 }
  0x76   : > { %3033 = vmatmul.msk.f32.gmra.mxu2 %vm274_vm1, %v703_v51 }
  0x77   : > { %3099 = vmatmul.msk.f32.gmra.mxu3 %vm274_vm1, %v3065_v52 }
  0x78   : > { %3165 = vmatmul.msk.f32.gmra.mxu0 %vm274_vm1, %v247_v40 }
  0x7d   : > { %3000 = vmatmul.msk.f32.gmra.mxu1 %vm274_vm1, %v3062_v43  ;;  %v4044_v43 = vld [vmem:[%s3716_s20 + $0xc0] sm:$0xff] }
  0x7e   : > { %3034 = vmatmul.msk.f32.gmra.mxu2 %vm274_vm1, %v3899_v53  ;;  %4919 = vst [vmem:[#allocation16_spill] sm:$0xff] %v4044_v43 }
  0x7f   : > { %3100 = vmatmul.msk.f32.gmra.mxu3 %vm274_vm1, %v3902_v54 }
  0x80   : > { %3166 = vmatmul.msk.f32.gmra.mxu0 %vm274_vm1, %v3719_v5 }
  0x85   : > { %3001 = vmatmul.msk.f32.gmra.mxu1 %vm274_vm1, %v3063_v46 }
  0x86   : > { %3035 = vmatmul.msk.f32.gmra.mxu2 %vm274_vm1, %v3912_v55 }
  0x87   : > { %3101 = vmatmul.msk.f32.gmra.mxu3 %vm274_vm1, %v3915_v56 }
  0x88   : > { %3167 = vmatmul.msk.f32.gmra.mxu0 %vm274_vm1, %v3736_v9 }
  0x8d   : > { %3002 = vmatmul.msk.f32.gmra.mxu1 %vm274_vm1, %v3064_v49 }
  0x8e   : > { %3036 = vmatmul.msk.f32.gmra.mxu2 %vm274_vm1, %v3925_v57 }
  0x8f   : > { %3102 = vmatmul.msk.f32.gmra.mxu3 %vm274_vm1, %v3928_v58 }
  0x90   : > { %3168 = vmatmul.msk.f32.gmra.mxu0 %vm274_vm1, %v3753_v13 }
  0x95   : > { %3003 = vmatmul.msk.f32.gmra.mxu1 %vm274_vm1, %v3065_v52  ;;  %v4085_v52 = vld [vmem:[%s3716_s20 + $0xac] sm:$0xff] }
  0x96   : > { %3037 = vmatmul.msk.f32.gmra.mxu2 %vm274_vm1, %v3938_v59  ;;  %4925 = vst [vmem:[#allocation22_spill] sm:$0xff] %v4085_v52 }
  0x97   : > { %3103 = vmatmul.msk.f32.gmra.mxu3 %vm274_vm1, %v3941_v60 }
  0x98   : > { %3169 = vmatmul.msk.f32.gmra.mxu0 %vm274_vm1, %v3770_v17 }
  0x9a   : > { %v3950_v61 = vpop.f32.mrf.mxu1 }
  0x9d   : > { %v3958_v0 = vpop.f32.mrf.mxu0  ;;  %3004 = vmatmul.msk.f32.gmra.mxu1 %vm274_vm1, %v3902_v54 }
  0x9e   : > { %3038 = vmatmul.msk.f32.gmra.mxu2 %vm274_vm1, %v3953_v62 }
  0x9f   : > { %3104 = vmatmul.msk.f32.gmra.mxu3 %vm274_vm1, %v3956_v63 }
  0xa0   : > { %3170 = vmatmul.msk.f32.gmra.mxu0 %vm274_vm1, %v3787_v21  ;;  %v3997_v21 = vld [vmem:[%s3716_s20 + $0x7c] sm:$0xff] }
  0xa1   : > { %v3968_v1 = vpop.f32.mrf.mxu2 }
  0xa2   : > { %v3970_v2 = vpop.f32.mrf.mxu3  ;;  %v3972_v3 = vpop.f32.mrf.mxu1 }
  0xa3   : > { %4911 = vst [vmem:[#allocation8_spill] sm:$0xff] %v3970_v2  ;;  %v4110_v2 = vld [vmem:[%s3716_s20 + $0xe0] sm:$0xff] }
  0xa5   : > { %v3980_v12 = vpop.f32.mrf.mxu0  ;;  %3005 = vmatmul.msk.f32.gmra.mxu1 %vm274_vm1, %v3915_v56 }
  0xa6   : > { %3039 = vmatmul.msk.f32.gmra.mxu2 %vm274_vm1, %v3975_v4 }
  0xa7   : > { %3105 = vmatmul.msk.f32.gmra.mxu3 %vm274_vm1, %v3978_v8 }
  0xa8   : > { %3171 = vmatmul.msk.f32.gmra.mxu0 %vm274_vm1, %v3816_v28 }
  0xa9   : > { %v3990_v16 = vpop.f32.mrf.mxu2 }
  0xaa   : > { %v3992_v17 = vpop.f32.mrf.mxu3  ;;  %v3994_v20 = vpop.f32.mrf.mxu1 }
  0xab   : > { %4913 = vst [vmem:[#allocation10_spill] sm:$0xff] %v3992_v17  ;;  %v4107_v17 = vld [vmem:[%s3716_s20 + $0xb4] sm:$0xff] }
  0xac   : > { %4928 = vst [vmem:[#allocation25_spill] sm:$0xff] %v4107_v17 }
  0xad   : > { %v4002_v25 = vpop.f32.mrf.mxu0  ;;  %3006 = vmatmul.msk.f32.gmra.mxu1 %vm274_vm1, %v3928_v58 }
  0xae   : > { %3040 = vmatmul.msk.f32.gmra.mxu2 %vm274_vm1, %v3997_v21 }
  0xaf   : > { %3106 = vmatmul.msk.f32.gmra.mxu3 %vm274_vm1, %v4000_v24 }
  0xb0   : > { %3172 = vmatmul.msk.f32.gmra.mxu0 %vm274_vm1, %v3837_v33 }
  0xb1   : > { %v4012_v26 = vpop.f32.mrf.mxu2 }
  0xb2   : > { %v4014_v27 = vpop.f32.mrf.mxu3  ;;  %v4016_v28 = vpop.f32.mrf.mxu1 }
  0xb3   : > { %4915 = vst [vmem:[#allocation12_spill] sm:$0xff] %v4014_v27 }
  0xb5   : > { %v4024_v36 = vpop.f32.mrf.mxu0  ;;  %3007 = vmatmul.msk.f32.gmra.mxu1 %vm274_vm1, %v3941_v60 }
  0xb6   : > { %3041 = vmatmul.msk.f32.gmra.mxu2 %vm274_vm1, %v4019_v31 }
  0xb7   : > { %3107 = vmatmul.msk.f32.gmra.mxu3 %vm274_vm1, %v4022_v32 }
  0xb8   : > { %3173 = vmatmul.msk.f32.gmra.mxu0 %vm274_vm1, %v3854_v37 }
  0xb9   : > { %v4034_v33 = vpop.f32.mrf.mxu2 }
  0xba   : > { %v4036_v40 = vpop.f32.mrf.mxu3  ;;  %v4038_v41 = vpop.f32.mrf.mxu1 }
  0xbb   : > { %4917 = vst [vmem:[#allocation14_spill] sm:$0xff] %v4036_v40 }
  0xbd   : > { %v4046_v44 = vpop.f32.mrf.mxu0  ;;  %3008 = vmatmul.msk.f32.gmra.mxu1 %vm274_vm1, %v3956_v63 }
  0xbe   : > { %3042 = vmatmul.msk.f32.gmra.mxu2 %vm274_vm1, %v4041_v42 }
  0xbf   : > { %3108 = vmatmul.msk.f32.gmra.mxu3 %vm274_vm1, %v4044_v43 }
  0xc0   : > { %3174 = vmatmul.msk.f32.gmra.mxu0 %vm274_vm1, %v3722_v6 }
  0xc1   : > { %v4056_v37 = vpop.f32.mrf.mxu2 }
  0xc2   : > { %4920 = vst [vmem:[#allocation17_spill] sm:$0xff] %v4056_v37  ;;  %v4058_v45 = vpop.f32.mrf.mxu3  ;;  %v4060_v46 = vpop.f32.mrf.mxu1  ;;  %v4145_v37 = vld [vmem:[%s3716_s20 + $0xf8] sm:$0xff] }
  0xc3   : > { %4921 = vst [vmem:[#allocation18_spill] sm:$0xff] %v4058_v45  ;;  %v4088_v45 = vld [vmem:[%s3716_s20 + $0xd8] sm:$0xff] }
  0xc5   : > { %v4068_v49 = vpop.f32.mrf.mxu0  ;;  %3009 = vmatmul.msk.f32.gmra.mxu1 %vm274_vm1, %v3978_v8  ;;  %v4142_v8 = vld [vmem:[%s3716_s20 + $0xcc] sm:$0xff] }
  0xc6   : > { %3043 = vmatmul.msk.f32.gmra.mxu2 %vm274_vm1, %v4063_v47 }
  0xc7   : > { %3109 = vmatmul.msk.f32.gmra.mxu3 %vm274_vm1, %v4066_v48 }
  0xc8   : > { %3175 = vmatmul.msk.f32.gmra.mxu0 %vm274_vm1, %v3739_v10 }
  0xc9   : > { %v4078_v6 = vpop.f32.mrf.mxu2 }
  0xca   : > { %4923 = vst [vmem:[#allocation20_spill] sm:$0xff] %v4078_v6  ;;  %v4080_v50 = vpop.f32.mrf.mxu3  ;;  %v4082_v51 = vpop.f32.mrf.mxu1  ;;  %v4130_v6 = vld [vmem:[%s3716_s20 + $0xf0] sm:$0xff] }
  0xcb   : > { %4924 = vst [vmem:[#allocation21_spill] sm:$0xff] %v4080_v50 }
  0xcd   : > { %v4090_v40 = vpop.f32.mrf.mxu0  ;;  %3010 = vmatmul.msk.f32.gmra.mxu1 %vm274_vm1, %v4000_v24 }
  0xce   : > { %3044 = vmatmul.msk.f32.gmra.mxu2 %vm274_vm1, %v4085_v52  ;;  %v4127_v52 = vld [vmem:[%s3716_s20 + $0xc4] sm:$0xff] }
  0xcf   : > { %3110 = vmatmul.msk.f32.gmra.mxu3 %vm274_vm1, %v4088_v45  ;;  %4931 = vst [vmem:[#allocation28_spill] sm:$0xff] %v4127_v52 }
  0xd0   : > { %3176 = vmatmul.msk.f32.gmra.mxu0 %vm274_vm1, %v3756_v14 }
  0xd1   : > { %v4100_v10 = vpop.f32.mrf.mxu2 }
  0xd2   : > { %4926 = vst [vmem:[#allocation23_spill] sm:$0xff] %v4100_v10  ;;  %v4102_v50 = vpop.f32.mrf.mxu3  ;;  %v4104_v27 = vpop.f32.mrf.mxu1 }
  0xd3   : > { %4927 = vst [vmem:[#allocation24_spill] sm:$0xff] %v4102_v50 }
  0xd5   : > { %v4112_v24 = vpop.f32.mrf.mxu0  ;;  %3011 = vmatmul.msk.f32.gmra.mxu1 %vm274_vm1, %v4022_v32 }
  0xd6   : > { %3045 = vmatmul.msk.f32.gmra.mxu2 %vm274_vm1, %v4107_v17 }
  0xd7   : > { %3111 = vmatmul.msk.f32.gmra.mxu3 %vm274_vm1, %v4110_v2 }
  0xd8   : > { %3177 = vmatmul.msk.f32.gmra.mxu0 %vm274_vm1, %v3773_v18 }
  0xd9   : > { %v4122_v14 = vpop.f32.mrf.mxu2 }
  0xda   : > { %4929 = vst [vmem:[#allocation26_spill] sm:$0xff] %v4122_v14  ;;  %v4124_v50 = vpop.f32.mrf.mxu3  ;;  %v604_v10 = vpop.f32.mrf.mxu1 }
  0xdb   : > { %4930 = vst [vmem:[#allocation27_spill] sm:$0xff] %v4124_v50  ;;  %v605_v18 = vadd.f32 %v604_v10, %v3958_v0 }
  0xdd   : > { %v1407_v32 = vpop.f32.mrf.mxu0  ;;  %3012 = vmatmul.msk.f32.gmra.mxu1 %vm274_vm1, %v4044_v43 }
  0xde   : > { %3046 = vmatmul.msk.f32.gmra.mxu2 %vm274_vm1, %v4127_v52 }
  0xdf   : > { %3112 = vmatmul.msk.f32.gmra.mxu3 %vm274_vm1, %v4130_v6 }
  0xe0   : > { %3178 = vmatmul.msk.f32.gmra.mxu0 %vm274_vm1, %v3790_v22 }
  0xe1   : > { %v850_v50 = vpop.f32.mrf.mxu2 }
  0xe2   : > { %v946_v14 = vadd.f32 %v850_v50, %v605_v18  ;;  %v1129_v17 = vpop.f32.mrf.mxu3  ;;  %v607_v47 = vpop.f32.mrf.mxu1 }
  0xe3   : > { %v608_v22 = vadd.f32 %v607_v47, %v3980_v12 }
  0xe4   : > { %v1225_v43 = vadd.f32 %v1129_v17, %v946_v14  ;;  %v4162_v14 = vld [vmem:[%s3716_s20 + $0x108] sm:$0xff] }
  0xe5   : > { %v1410_v52 = vpop.f32.mrf.mxu0  ;;  %3013 = vmatmul.msk.f32.gmra.mxu1 %vm274_vm1, %v4066_v48 }
  0xe6   : > { %v4147_v42 = vadd.f32 %v1407_v32, %v1225_v43  ;;  %3047 = vmatmul.msk.f32.gmra.mxu2 %vm274_vm1, %v4142_v8  ;;  %v4159_v43 = vld [vmem:[%s3716_s20 + $0xdc] sm:$0xff] }
  0xe7   : > { %3113 = vmatmul.msk.f32.gmra.mxu3 %vm274_vm1, %v4145_v37 }
  0xe8   : > { %4932 = vst [vmem:[#allocation29_spill] sm:$0xff] %v4147_v42  ;;  %3179 = vmatmul.msk.f32.gmra.mxu0 %vm274_vm1, %v3819_v29 }
  0xe9   : > { %v853_v0 = vpop.f32.mrf.mxu2 }
  0xea   : > { %v947_v17 = vadd.f32 %v853_v0, %v608_v22  ;;  %v1132_v50 = vpop.f32.mrf.mxu3  ;;  %v610_v32 = vpop.f32.mrf.mxu1  ;;  %v4176_v0 = vld [vmem:[%s3716_s20 + $0xe4] sm:$0xff] }
  0xeb   : > { %v611_v29 = vadd.f32 %v610_v32, %v4002_v25 }
  0xec   : > { %v1226_v10 = vadd.f32 %v1132_v50, %v947_v17  ;;  %v4179_v50 = vld [vmem:[%s3716_s20 + $0x110] sm:$0xff] }
  0xed   : > { %v1413_v18 = vpop.f32.mrf.mxu0  ;;  %3014 = vmatmul.msk.f32.gmra.mxu1 %vm274_vm1, %v4088_v45 }
  0xee   : > { %v4164_v42 = vadd.f32 %v1410_v52, %v1226_v10  ;;  %3048 = vmatmul.msk.f32.gmra.mxu2 %vm274_vm1, %v4159_v43 }
  0xef   : > { %3114 = vmatmul.msk.f32.gmra.mxu3 %vm274_vm1, %v4162_v14 }
  0xf0   : > { %4933 = vst [vmem:[#allocation30_spill] sm:$0xff] %v4164_v42  ;;  %3180 = vmatmul.msk.f32.gmra.mxu0 %vm274_vm1, %v3840_v34 }
  0xf1   : > { %v856_v12 = vpop.f32.mrf.mxu2 }
  0xf2   : > { %v948_v47 = vadd.f32 %v856_v12, %v611_v29  ;;  %v1135_v22 = vpop.f32.mrf.mxu3  ;;  %v613_v52 = vpop.f32.mrf.mxu1  ;;  %v4193_v12 = vld [vmem:[%s3716_s20 + $0xf4] sm:$0xff] }
  0xf3   : > { %v614_v34 = vadd.f32 %v613_v52, %v4024_v36 }
  0xf4   : > { %v1227_v17 = vadd.f32 %v1135_v22, %v948_v47  ;;  %v4196_v22 = vld [vmem:[%s3716_s20 + $0x120] sm:$0xff] }
  0xf5   : > { %v1416_v10 = vpop.f32.mrf.mxu0  ;;  %3015 = vmatmul.msk.f32.gmra.mxu1 %vm274_vm1, %v4110_v2 }
  0xf6   : > { %v4181_v42 = vadd.f32 %v1413_v18, %v1227_v17  ;;  %3049 = vmatmul.msk.f32.gmra.mxu2 %vm274_vm1, %v4176_v0 }
  0xf7   : > { %3115 = vmatmul.msk.f32.gmra.mxu3 %vm274_vm1, %v4179_v50 }
  0xf8   : > { %4934 = vst [vmem:[#allocation31_spill] sm:$0xff] %v4181_v42  ;;  %3181 = vmatmul.msk.f32.gmra.mxu0 %vm274_vm1, %v3857_v38 }
  0xf9   : > { %v859_v25 = vpop.f32.mrf.mxu2 }
  0xfa   : > { %v949_v32 = vadd.f32 %v859_v25, %v614_v34  ;;  %v1138_v29 = vpop.f32.mrf.mxu3  ;;  %v616_v18 = vpop.f32.mrf.mxu1  ;;  %v4210_v25 = vld [vmem:[%s3716_s20 + $0xfc] sm:$0xff] }
  0xfb   : > { %v617_v38 = vadd.f32 %v616_v18, %v4046_v44 }
  0xfc   : > { %v1228_v47 = vadd.f32 %v1138_v29, %v949_v32  ;;  %v4213_v29 = vld [vmem:[%s3716_s20 + $0x128] sm:$0xff] }
  0xfd   : > { %v1419_v17 = vpop.f32.mrf.mxu0  ;;  %3016 = vmatmul.msk.f32.gmra.mxu1 %vm274_vm1, %v4130_v6 }
  0xfe   : > { %v4198_v42 = vadd.f32 %v1416_v10, %v1228_v47  ;;  %3050 = vmatmul.msk.f32.gmra.mxu2 %vm274_vm1, %v4193_v12 }
  0xff   : > { %3116 = vmatmul.msk.f32.gmra.mxu3 %vm274_vm1, %v4196_v22 }
 0x100   : > { %4935 = vst [vmem:[#allocation32_spill] sm:$0xff] %v4198_v42  ;;  %3182 = vmatmul.msk.f32.gmra.mxu0 %vm274_vm1, %v3725_v7 }
 0x101   : > { %v862_v36 = vpop.f32.mrf.mxu2 }
 0x102   : > { %v950_v52 = vadd.f32 %v862_v36, %v617_v38  ;;  %v1141_v34 = vpop.f32.mrf.mxu3  ;;  %v619_v10 = vpop.f32.mrf.mxu1  ;;  %v4227_v36 = vld [vmem:[%s3716_s20 + $0x10c] sm:$0xff] }
 0x103   : > { %v620_v7 = vadd.f32 %v619_v10, %v4068_v49 }
 0x104   : > { %v1229_v32 = vadd.f32 %v1141_v34, %v950_v52  ;;  %v4230_v34 = vld [vmem:[%s3716_s20 + $0x138] sm:$0xff] }
 0x105   : > { %v1422_v47 = vpop.f32.mrf.mxu0  ;;  %3017 = vmatmul.msk.f32.gmra.mxu1 %vm274_vm1, %v4145_v37 }
 0x106   : > { %v4215_v42 = vadd.f32 %v1419_v17, %v1229_v32  ;;  %3051 = vmatmul.msk.f32.gmra.mxu2 %vm274_vm1, %v4210_v25 }
 0x107   : > { %3117 = vmatmul.msk.f32.gmra.mxu3 %vm274_vm1, %v4213_v29 }
 0x108   : > { %4936 = vst [vmem:[#allocation33_spill] sm:$0xff] %v4215_v42  ;;  %3183 = vmatmul.msk.f32.gmra.mxu0 %vm274_vm1, %v3742_v11 }
 0x109   : > { %v865_v44 = vpop.f32.mrf.mxu2 }
 0x10a   : > { %v951_v18 = vadd.f32 %v865_v44, %v620_v7  ;;  %v1144_v38 = vpop.f32.mrf.mxu3  ;;  %v622_v17 = vpop.f32.mrf.mxu1  ;;  %v4244_v44 = vld [vmem:[%s3716_s20 + $0x114] sm:$0xff] }
 0x10b   : > { %v623_v11 = vadd.f32 %v622_v17, %v4090_v40 }
 0x10c   : > { %v1230_v52 = vadd.f32 %v1144_v38, %v951_v18  ;;  %v4247_v38 = vld [vmem:[%s3716_s20 + $0x140] sm:$0xff] }
 0x10d   : > { %v1425_v32 = vpop.f32.mrf.mxu0  ;;  %3018 = vmatmul.msk.f32.gmra.mxu1 %vm274_vm1, %v4162_v14 }
 0x10e   : > { %v4232_v42 = vadd.f32 %v1422_v47, %v1230_v52  ;;  %3052 = vmatmul.msk.f32.gmra.mxu2 %vm274_vm1, %v4227_v36 }
 0x10f   : > { %3118 = vmatmul.msk.f32.gmra.mxu3 %vm274_vm1, %v4230_v34 }
 0x110   : > { %4937 = vst [vmem:[#allocation34_spill] sm:$0xff] %v4232_v42  ;;  %3184 = vmatmul.msk.f32.gmra.mxu0 %vm274_vm1, %v3759_v15 }
 0x111   : > { %v868_v49 = vpop.f32.mrf.mxu2 }
 0x112   : > { %v952_v10 = vadd.f32 %v868_v49, %v623_v11  ;;  %v1147_v7 = vpop.f32.mrf.mxu3  ;;  %v625_v47 = vpop.f32.mrf.mxu1  ;;  %v4261_v49 = vld [vmem:[%s3716_s20 + $0x124] sm:$0xff] }
 0x113   : > { %v626_v15 = vadd.f32 %v625_v47, %v4112_v24 }
 0x114   : > { %v1231_v18 = vadd.f32 %v1147_v7, %v952_v10  ;;  %v4264_v7 = vld [vmem:[%s3716_s20 + $0x150] sm:$0xff] }
 0x115   : > { %v1428_v52 = vpop.f32.mrf.mxu0  ;;  %3019 = vmatmul.msk.f32.gmra.mxu1 %vm274_vm1, %v4179_v50 }
 0x116   : > { %v4249_v42 = vadd.f32 %v1425_v32, %v1231_v18  ;;  %3053 = vmatmul.msk.f32.gmra.mxu2 %vm274_vm1, %v4244_v44 }
 0x117   : > { %3119 = vmatmul.msk.f32.gmra.mxu3 %vm274_vm1, %v4247_v38 }
 0x118   : > { %4938 = vst [vmem:[#allocation35_spill] sm:$0xff] %v4249_v42  ;;  %3185 = vmatmul.msk.f32.gmra.mxu0 %vm274_vm1, %v3776_v19 }
 0x119   : > { %v871_v40 = vpop.f32.mrf.mxu2 }
 0x11a   : > { %v953_v17 = vadd.f32 %v871_v40, %v626_v15  ;;  %v1150_v11 = vpop.f32.mrf.mxu3  ;;  %v628_v32 = vpop.f32.mrf.mxu1  ;;  %v4278_v40 = vld [vmem:[%s3716_s20 + $0x12c] sm:$0xff] }
 0x11b   : > { %v629_v19 = vadd.f32 %v628_v32, %v3950_v61 }
 0x11c   : > { %v1232_v10 = vadd.f32 %v1150_v11, %v953_v17  ;;  %v4281_v11 = vld [vmem:[%s3716_s20 + $0x158] sm:$0xff] }
 0x11d   : > { %v1431_v18 = vpop.f32.mrf.mxu0  ;;  %3020 = vmatmul.msk.f32.gmra.mxu1 %vm274_vm1, %v4196_v22 }
 0x11e   : > { %v4266_v42 = vadd.f32 %v1428_v52, %v1232_v10  ;;  %3054 = vmatmul.msk.f32.gmra.mxu2 %vm274_vm1, %v4261_v49 }
 0x11f   : > { %3120 = vmatmul.msk.f32.gmra.mxu3 %vm274_vm1, %v4264_v7 }
 0x120   : > { %4939 = vst [vmem:[#allocation36_spill] sm:$0xff] %v4266_v42  ;;  %3186 = vmatmul.msk.f32.gmra.mxu0 %vm274_vm1, %v3793_v23 }
 0x121   : > { %v874_v24 = vpop.f32.mrf.mxu2 }
 0x122   : > { %v954_v47 = vadd.f32 %v874_v24, %v629_v19  ;;  %v1153_v15 = vpop.f32.mrf.mxu3  ;;  %v631_v52 = vpop.f32.mrf.mxu1  ;;  %v4295_v24 = vld [vmem:[%s3716_s20 + $0x13c] sm:$0xff] }
 0x123   : > { %v632_v23 = vadd.f32 %v631_v52, %v3972_v3 }
 0x124   : > { %v1233_v17 = vadd.f32 %v1153_v15, %v954_v47  ;;  %v4298_v15 = vld [vmem:[%s3716_s20 + $0x168] sm:$0xff] }
 0x125   : > { %v1434_v10 = vpop.f32.mrf.mxu0  ;;  %3021 = vmatmul.msk.f32.gmra.mxu1 %vm274_vm1, %v4213_v29 }
 0x126   : > { %v4283_v42 = vadd.f32 %v1431_v18, %v1233_v17  ;;  %3055 = vmatmul.msk.f32.gmra.mxu2 %vm274_vm1, %v4278_v40 }
 0x127   : > { %3121 = vmatmul.msk.f32.gmra.mxu3 %vm274_vm1, %v4281_v11 }
 0x128   : > { %4940 = vst [vmem:[#allocation37_spill] sm:$0xff] %v4283_v42  ;;  %3187 = vmatmul.msk.f32.gmra.mxu0 %vm274_vm1, %v3822_v30 }
 0x129   : > { %v877_v61 = vpop.f32.mrf.mxu2 }
 0x12a   : > { %v955_v32 = vadd.f32 %v877_v61, %v632_v23  ;;  %v1156_v19 = vpop.f32.mrf.mxu3  ;;  %v634_v18 = vpop.f32.mrf.mxu1  ;;  %v4312_v61 = vld [vmem:[%s3716_s20 + $0x144] sm:$0xff] }
 0x12b   : > { %v635_v30 = vadd.f32 %v634_v18, %v3994_v20  ;;  %4942 = vst [vmem:[#allocation39_spill] sm:$0xff] %v4312_v61 }
 0x12c   : > { %v1234_v47 = vadd.f32 %v1156_v19, %v955_v32  ;;  %v4315_v19 = vld [vmem:[%s3716_s20 + $0x170] sm:$0xff] }
 0x12d   : > { %v1437_v17 = vpop.f32.mrf.mxu0  ;;  %3022 = vmatmul.msk.f32.gmra.mxu1 %vm274_vm1, %v4230_v34 }
 0x12e   : > { %v4300_v42 = vadd.f32 %v1434_v10, %v1234_v47  ;;  %3056 = vmatmul.msk.f32.gmra.mxu2 %vm274_vm1, %v4295_v24 }
 0x12f   : > { %3122 = vmatmul.msk.f32.gmra.mxu3 %vm274_vm1, %v4298_v15 }
 0x130   : > { %4941 = vst [vmem:[#allocation38_spill] sm:$0xff] %v4300_v42  ;;  %3188 = vmatmul.msk.f32.gmra.mxu0 %vm274_vm1, %v3843_v35 }
 0x131   : > { %v880_v3 = vpop.f32.mrf.mxu2 }
 0x132   : > { %v956_v52 = vadd.f32 %v880_v3, %v635_v30  ;;  %v1159_v23 = vpop.f32.mrf.mxu3  ;;  %v637_v10 = vpop.f32.mrf.mxu1 }
 0x133   : > { %v638_v35 = vadd.f32 %v637_v10, %v4016_v28 }
 0x134   : > { %v1235_v32 = vadd.f32 %v1159_v23, %v956_v52  ;;  %v4332_v23 = vld [vmem:[%s3716_s20 + $0x180] sm:$0xff] }
 0x135   : > { %v1440_v47 = vpop.f32.mrf.mxu0  ;;  %3023 = vmatmul.msk.f32.gmra.mxu1 %vm274_vm1, %v4247_v38  ;;  %4944 = vst [vmem:[#allocation41_spill] sm:$0xff] %v4332_v23 }
 0x136   : > { %v4317_v42 = vadd.f32 %v1437_v17, %v1235_v32  ;;  %3057 = vmatmul.msk.f32.gmra.mxu2 %vm274_vm1, %v4312_v61  ;;  %v4329_v17 = vld [vmem:[%s3716_s20 + $0x154] sm:$0xff] }
 0x137   : > { %3123 = vmatmul.msk.f32.gmra.mxu3 %vm274_vm1, %v4315_v19 }
 0x138   : > { %4943 = vst [vmem:[#allocation40_spill] sm:$0xff] %v4317_v42  ;;  %3189 = vmatmul.msk.f32.gmra.mxu0 %vm274_vm1, %v3860_v39  ;;  %v4335_v42 = vld [vmem:[%s3716_s20 + $0x182] sm:$0xff] }
 0x139   : > { %v883_v20 = vpop.f32.mrf.mxu2  ;;  %4945 = vst [vmem:[#allocation42_spill] sm:$0xff] %v4335_v42 }
 0x13a   : > { %v957_v18 = vadd.f32 %v883_v20, %v638_v35  ;;  %v1162_v30 = vpop.f32.mrf.mxu3  ;;  %v640_v3 = vpop.f32.mrf.mxu1 }
 0x13b   : > { %v641_v39 = vadd.f32 %v640_v3, %v4038_v41 }
 0x13c   : > { %v1236_v52 = vadd.f32 %v1162_v30, %v957_v18  ;;  %v4352_v30 = vld [vmem:[%s3716_s20 + $0x188] sm:$0xff] }
 0x13d   : > { %v1443_v32 = vpop.f32.mrf.mxu0  ;;  %3024 = vmatmul.msk.f32.gmra.mxu1 %vm274_vm1, %v4264_v7  ;;  %4947 = vst [vmem:[#allocation44_spill] sm:$0xff] %v4352_v30 }
 0x13e   : > { %v4337_v61 = vadd.f32 %v1440_v47, %v1236_v52  ;;  %3058 = vmatmul.msk.f32.gmra.mxu2 %vm274_vm1, %v4329_v17  ;;  %v4349_v47 = vld [vmem:[%s3716_s20 + $0x15c] sm:$0xff] }
 0x13f   : > { %3124 = vmatmul.msk.f32.gmra.mxu3 %vm274_vm1, %v4332_v23 }
 0x140   : > { %4946 = vst [vmem:[#allocation43_spill] sm:$0xff] %v4337_v61  ;;  %3190 = vmatmul.msk.f32.gmra.mxu0 %vm274_vm1, %v4335_v42  ;;  %v4355_v61 = vld [vmem:[%s3716_s20 + $0x18a] sm:$0xff]  ;;  %v4375_v42 = vld [vmem:[%s3716_s20 + $0x19a] sm:$0xff] }
 0x141   : > { %v886_v28 = vpop.f32.mrf.mxu2  ;;  %4948 = vst [vmem:[#allocation45_spill] sm:$0xff] %v4355_v61 }
 0x142   : > { %v958_v10 = vadd.f32 %v886_v28, %v641_v39  ;;  %v1165_v35 = vpop.f32.mrf.mxu3  ;;  %v643_v20 = vpop.f32.mrf.mxu1 }
 0x143   : > { %v644_v41 = vadd.f32 %v643_v20, %v4060_v46 }
 0x144   : > { %v1237_v18 = vadd.f32 %v1165_v35, %v958_v10 }
 0x145   : > { %v1446_v52 = vpop.f32.mrf.mxu0  ;;  %3025 = vmatmul.msk.f32.gmra.mxu1 %vm274_vm1, %v4281_v11 }
 0x146   : > { %v4357_v23 = vadd.f32 %v1443_v32, %v1237_v18  ;;  %3059 = vmatmul.msk.f32.gmra.mxu2 %vm274_vm1, %v4349_v47  ;;  %v4369_v32 = vld [vmem:[%s3716_s20 + $0x16c] sm:$0xff]  ;;  %v4372_v18 = vld [vmem:[%s3716_s20 + $0x198] sm:$0xff] }
 0x147   : > { %3125 = vmatmul.msk.f32.gmra.mxu3 %vm274_vm1, %v4352_v30  ;;  %4950 = vst [vmem:[#allocation47_spill] sm:$0xff] %v4369_v32 }
 0x148   : > { %4949 = vst [vmem:[#allocation46_spill] sm:$0xff] %v4357_v23  ;;  %3191 = vmatmul.msk.f32.gmra.mxu0 %vm274_vm1, %v4355_v61  ;;  %v4395_v61 = vld [vmem:[%s3716_s20 + $0x1a2] sm:$0xff] }
 0x149   : > { %v889_v3 = vpop.f32.mrf.mxu2 }
 0x14a   : > { %v959_v39 = vadd.f32 %v889_v3, %v644_v41  ;;  %v1168_v28 = vpop.f32.mrf.mxu3  ;;  %v646_v10 = vpop.f32.mrf.mxu1 }
 0x14b   : > { %v647_v46 = vadd.f32 %v646_v10, %v4082_v51 }
 0x14c   : > { %v1238_v35 = vadd.f32 %v1168_v28, %v959_v39 }
 0x14d   : > { %v1449_v23 = vpop.f32.mrf.mxu0  ;;  %3026 = vmatmul.msk.f32.gmra.mxu1 %vm274_vm1, %v4298_v15 }
 0x14e   : > { %v4377_v30 = vadd.f32 %v1446_v52, %v1238_v35  ;;  %3060 = vmatmul.msk.f32.gmra.mxu2 %vm274_vm1, %v4369_v32  ;;  %v4389_v52 = vld [vmem:[%s3716_s20 + $0x174] sm:$0xff]  ;;  %v4392_v35 = vld [vmem:[%s3716_s20 + $0x1a0] sm:$0xff] }
 0x14f   : > { %3126 = vmatmul.msk.f32.gmra.mxu3 %vm274_vm1, %v4372_v18 }
 0x150   : > { %4951 = vst [vmem:[#allocation48_spill] sm:$0xff] %v4377_v30  ;;  %3192 = vmatmul.msk.f32.gmra.mxu0 %vm274_vm1, %v4375_v42 }
 0x151   : > { %v892_v20 = vpop.f32.mrf.mxu2 }
 0x152   : > { %v960_v41 = vadd.f32 %v892_v20, %v647_v46  ;;  %v1171_v3 = vpop.f32.mrf.mxu3  ;;  %v649_v39 = vpop.f32.mrf.mxu1 }
 0x153   : > { %v650_v51 = vadd.f32 %v649_v39, %v4104_v27 }
 0x154   : > { %v1239_v28 = vadd.f32 %v1171_v3, %v960_v41 }
 0x155   : > { %v1452_v30 = vpop.f32.mrf.mxu0  ;;  %3027 = vmatmul.msk.f32.gmra.mxu1 %vm274_vm1, %v4315_v19 }
 0x156   : > { %v4397_v32 = vadd.f32 %v1449_v23, %v1239_v28  ;;  %3061 = vmatmul.msk.f32.gmra.mxu2 %vm274_vm1, %v4389_v52 }
 0x157   : > { %3127 = vmatmul.msk.f32.gmra.mxu3 %vm274_vm1, %v4392_v35 }
 0x158   : > { %3193 = vmatmul.msk.f32.gmra.mxu0 %vm274_vm1, %v4395_v61 }
 0x159   : > { %v895_v10 = vpop.f32.mrf.mxu2 }
 0x15a   : > { %v961_v46 = vadd.f32 %v895_v10, %v650_v51  ;;  %v1174_v20 = vpop.f32.mrf.mxu3  ;;  %v652_v41 = vpop.f32.mrf.mxu1 }
 0x15b   : > { %v653_v27 = vadd.f32 %v652_v41, %v3968_v1 }
 0x15c   : > { %v1240_v23 = vadd.f32 %v1174_v20, %v961_v46 }
 0x15d   : > { %v1455_v3 = vpop.f32.mrf.mxu0  ;;  %3228 = vmatmul.msk.f32.vlgmr.msra.gmra.mxu1 %vm274_vm1, %v3899_v53 }
 0x15e   : > { %v4408_v28 = vadd.f32 %v1452_v30, %v1240_v23  ;;  %3294 = vmatmul.msk.f32.vlgmr.msra.gmra.mxu2 %vm274_vm1, %v3902_v54 }
 0x15f   : > { %3360 = vmatmul.msk.f32.vlgmr.msra.gmra.mxu3 %vm274_vm1, %v3719_v5 }
 0x160   : > { %3426 = vmatmul.msk.f32.vlgmr.msra.gmra.mxu0 %vm274_vm1, %v3953_v62 }
 0x161   : > { %v898_v39 = vpop.f32.mrf.mxu2 }
 0x162   : > { %v962_v51 = vadd.f32 %v898_v39, %v653_v27  ;;  %v1177_v10 = vpop.f32.mrf.mxu3  ;;  %v655_v46 = vpop.f32.mrf.mxu1 }
 0x163   : > { %v656_v5 = vadd.f32 %v655_v46, %v3990_v16  ;;  %v3329_v46 = vld [vmem:[%s3716_s20 + $0x82] sm:$0xff] }
 0x164   : > { %v1241_v30 = vadd.f32 %v1177_v10, %v962_v51 }
 0x165   : > { %v1458_v20 = vpop.f32.mrf.mxu0  ;;  %3229 = vmatmul.msk.f32.gmra.mxu1 %vm274_vm1, %v3912_v55 }
 0x166   : > { %v4419_v23 = vadd.f32 %v1455_v3, %v1241_v30  ;;  %3295 = vmatmul.msk.f32.gmra.mxu2 %vm274_vm1, %v3915_v56 }
 0x167   : > { %3361 = vmatmul.msk.f32.gmra.mxu3 %vm274_vm1, %v3736_v9 }
 0x168   : > { %3427 = vmatmul.msk.f32.gmra.mxu0 %vm274_vm1, %v3975_v4 }
 0x169   : > { %v901_v53 = vpop.f32.mrf.mxu2 }
 0x16a   : > { %v963_v54 = vadd.f32 %v901_v53, %v656_v5  ;;  %v1180_v1 = vpop.f32.mrf.mxu3  ;;  %v658_v41 = vpop.f32.mrf.mxu1 }
 0x16b   : > { %v659_v9 = vadd.f32 %v658_v41, %v4012_v26 }
 0x16c   : > { %v1242_v3 = vadd.f32 %v1180_v1, %v963_v54  ;;  %v3330_v54 = vld [vmem:[%s3716_s20 + $0x92] sm:$0xff] }
 0x16d   : > { %v1461_v27 = vpop.f32.mrf.mxu0  ;;  %3230 = vmatmul.msk.f32.gmra.mxu1 %vm274_vm1, %v3925_v57 }
 0x16e   : > { %v4430_v39 = vadd.f32 %v1458_v20, %v1242_v3  ;;  %3296 = vmatmul.msk.f32.gmra.mxu2 %vm274_vm1, %v3928_v58 }
 0x16f   : > { %3362 = vmatmul.msk.f32.gmra.mxu3 %vm274_vm1, %v3753_v13 }
 0x170   : > { %3428 = vmatmul.msk.f32.gmra.mxu0 %vm274_vm1, %v3997_v21 }
 0x171   : > { %v904_v55 = vpop.f32.mrf.mxu2 }
 0x172   : > { %v964_v56 = vadd.f32 %v904_v55, %v659_v9  ;;  %v1183_v16 = vpop.f32.mrf.mxu3  ;;  %v661_v51 = vpop.f32.mrf.mxu1 }
 0x173   : > { %v662_v13 = vadd.f32 %v661_v51, %v4034_v33 }
 0x174   : > { %v1243_v10 = vadd.f32 %v1183_v16, %v964_v56  ;;  %v3331_v16 = vld [vmem:[%s3716_s20 + $0x9a] sm:$0xff] }
 0x175   : > { %v1464_v30 = vpop.f32.mrf.mxu0  ;;  %3231 = vmatmul.msk.f32.gmra.mxu1 %vm274_vm1, %v3938_v59  ;;  %v4952_v59 = vld [vmem:[#allocation15_spill] sm:$0xff] }
 0x176   : > { %v4442_v57 = vadd.f32 %v1461_v27, %v1243_v10  ;;  %3297 = vmatmul.msk.f32.gmra.mxu2 %vm274_vm1, %v3941_v60  ;;  %v4953_v60 = vld [vmem:[#allocation17_spill] sm:$0xff] }
 0x177   : > { %3363 = vmatmul.msk.f32.gmra.mxu3 %vm274_vm1, %v3329_v46  ;;  %v4956_v46 = vld [vmem:[#allocation20_spill] sm:$0xff] }
 0x178   : > { %3429 = vmatmul.msk.f32.gmra.mxu0 %vm274_vm1, %v4019_v31 }
 0x179   : > { %v907_v58 = vpop.f32.mrf.mxu2 }
 0x17a   : > { %v965_v26 = vadd.f32 %v907_v58, %v662_v13  ;;  %v1186_v20 = vpop.f32.mrf.mxu3  ;;  %v664_v5 = vpop.f32.mrf.mxu1 }
 0x17b   : > { %v665_v33 = vadd.f32 %v664_v5, %v4953_v60  ;;  %v4958_v60 = vld [vmem:[#allocation22_spill] sm:$0xff] }
 0x17c   : > { %v1244_v53 = vadd.f32 %v1186_v20, %v965_v26 }
 0x17d   : > { %v1467_v1 = vpop.f32.mrf.mxu0  ;;  %3232 = vmatmul.msk.f32.gmra.mxu1 %vm274_vm1, %v3953_v62  ;;  %v4954_v62 = vld [vmem:[#allocation9_spill] sm:$0xff] }
 0x17e   : > { %v4453_v41 = vadd.f32 %v1464_v30, %v1244_v53  ;;  %3298 = vmatmul.msk.f32.gmra.mxu2 %vm274_vm1, %v3956_v63  ;;  %v4955_v63 = vld [vmem:[#allocation19_spill] sm:$0xff]  ;;  %v3332_v53 = vld [vmem:[%s3716_s20 + $0xaa] sm:$0xff] }
 0x17f   : > { %3364 = vmatmul.msk.f32.gmra.mxu3 %vm274_vm1, %v3330_v54 }
 0x180   : > { %3430 = vmatmul.msk.f32.gmra.mxu0 %vm274_vm1, %v4952_v59 }
 0x181   : > { %v910_v3 = vpop.f32.mrf.mxu2 }
 0x182   : > { %v966_v27 = vadd.f32 %v910_v3, %v665_v33  ;;  %v1189_v9 = vpop.f32.mrf.mxu3  ;;  %v667_v55 = vpop.f32.mrf.mxu1  ;;  %v4959_v33 = vld [vmem:[#allocation23_spill] sm:$0xff] }
 0x183   : > { %v668_v30 = vadd.f32 %v667_v55, %v4956_v46 }
 0x184   : > { %v1245_v56 = vadd.f32 %v1189_v9, %v966_v27 }
 0x185   : > { %v1470_v51 = vpop.f32.mrf.mxu0  ;;  %3233 = vmatmul.msk.f32.gmra.mxu1 %vm274_vm1, %v3975_v4  ;;  %v4957_v4 = vld [vmem:[#allocation11_spill] sm:$0xff] }
 0x186   : > { %v4464_v10 = vadd.f32 %v1467_v1, %v1245_v56  ;;  %3299 = vmatmul.msk.f32.gmra.mxu2 %vm274_vm1, %v4954_v62 }
 0x187   : > { %3365 = vmatmul.msk.f32.gmra.mxu3 %vm274_vm1, %v3331_v16 }
 0x188   : > { %3431 = vmatmul.msk.f32.gmra.mxu0 %vm274_vm1, %v4955_v63 }
 0x189   : > { %v913_v13 = vpop.f32.mrf.mxu2 }
 0x18a   : > { %v967_v58 = vadd.f32 %v913_v13, %v668_v30  ;;  %v1192_v26 = vpop.f32.mrf.mxu3  ;;  %v670_v20 = vpop.f32.mrf.mxu1  ;;  %v4961_v30 = vld [vmem:[#allocation25_spill] sm:$0xff]  ;;  %v4962_v13 = vld [vmem:[#allocation26_spill] sm:$0xff] }
 0x18b   : > { %v671_v3 = vadd.f32 %v670_v20, %v4959_v33 }
 0x18c   : > { %v1246_v5 = vadd.f32 %v1192_v26, %v967_v58 }
 0x18d   : > { %v1473_v54 = vpop.f32.mrf.mxu0  ;;  %3234 = vmatmul.msk.f32.gmra.mxu1 %vm274_vm1, %v3997_v21  ;;  %v4960_v21 = vld [vmem:[#allocation13_spill] sm:$0xff] }
 0x18e   : > { %v4475_v1 = vadd.f32 %v1470_v51, %v1246_v5  ;;  %3300 = vmatmul.msk.f32.gmra.mxu2 %vm274_vm1, %v4957_v4  ;;  %v3333_v51 = vld [vmem:[%s3716_s20 + $0xb2] sm:$0xff]  ;;  %v3334_v4 = vld [vmem:[%s3716_s20 + $0xc2] sm:$0xff] }
 0x18f   : > { %3366 = vmatmul.msk.f32.gmra.mxu3 %vm274_vm1, %v3332_v53 }
 0x190   : > { %3432 = vmatmul.msk.f32.gmra.mxu0 %vm274_vm1, %v4958_v60 }
 0x191   : > { %v916_v27 = vpop.f32.mrf.mxu2 }
 0x192   : > { %v968_v9 = vadd.f32 %v916_v27, %v671_v3  ;;  %v1195_v55 = vpop.f32.mrf.mxu3  ;;  %v673_v56 = vpop.f32.mrf.mxu1  ;;  %v4964_v27 = vld [vmem:[#allocation28_spill] sm:$0xff] }
 0x193   : > { %v674_v58 = vadd.f32 %v673_v56, %v4962_v13  ;;  %v3335_v13 = vld [vmem:[%s3716_s20 + $0xca] sm:$0xff] }
 0x194   : > { %v1247_v16 = vadd.f32 %v1195_v55, %v968_v9  ;;  %v4965_v9 = vld [vmem:[#allocation8_spill] sm:$0xff] }
 0x195   : > { %v1476_v62 = vpop.f32.mrf.mxu0  ;;  %3235 = vmatmul.msk.f32.gmra.mxu1 %vm274_vm1, %v4019_v31  ;;  %v4963_v31 = vld [vmem:[#allocation16_spill] sm:$0xff] }
 0x196   : > { %v4486_v46 = vadd.f32 %v1473_v54, %v1247_v16  ;;  %3301 = vmatmul.msk.f32.gmra.mxu2 %vm274_vm1, %v4960_v21 }
 0x197   : > { %3367 = vmatmul.msk.f32.gmra.mxu3 %vm274_vm1, %v3333_v51 }
 0x198   : > { %3433 = vmatmul.msk.f32.gmra.mxu0 %vm274_vm1, %v4961_v30 }
 0x199   : > { %v919_v26 = vpop.f32.mrf.mxu2 }
 0x19a   : > { %v969_v20 = vadd.f32 %v919_v26, %v674_v58  ;;  %v1198_v5 = vpop.f32.mrf.mxu3  ;;  %v676_v53 = vpop.f32.mrf.mxu1 }
 0x19b   : > { %v677_v55 = vadd.f32 %v676_v53, %v4965_v9 }
 0x19c   : > { %v1248_v54 = vadd.f32 %v1198_v5, %v969_v20 }
 0x19d   : > { %v1479_v33 = vpop.f32.mrf.mxu0  ;;  %3236 = vmatmul.msk.f32.gmra.mxu1 %vm274_vm1, %v4952_v59  ;;  %v4966_v59 = vld [vmem:[#allocation10_spill] sm:$0xff] }
 0x19e   : > { %v4497_v3 = vadd.f32 %v1476_v62, %v1248_v54  ;;  %3302 = vmatmul.msk.f32.gmra.mxu2 %vm274_vm1, %v4963_v31  ;;  %v3336_v31 = vld [vmem:[%s3716_s20 + $0xda] sm:$0xff] }
 0x19f   : > { %3368 = vmatmul.msk.f32.gmra.mxu3 %vm274_vm1, %v3334_v4 }
 0x1a0   : > { %3434 = vmatmul.msk.f32.gmra.mxu0 %vm274_vm1, %v4964_v27 }
 0x1a1   : > { %v922_v56 = vpop.f32.mrf.mxu2 }
 0x1a2   : > { %v970_v16 = vadd.f32 %v922_v56, %v677_v55  ;;  %v1201_v51 = vpop.f32.mrf.mxu3  ;;  %v679_v21 = vpop.f32.mrf.mxu1 }
 0x1a3   : > { %v680_v20 = vadd.f32 %v679_v21, %v4966_v59 }
 0x1a4   : > { %v1249_v62 = vadd.f32 %v1201_v51, %v970_v16 }
 0x1a5   : > { %v1482_v58 = vpop.f32.mrf.mxu0  ;;  %3237 = vmatmul.msk.f32.gmra.mxu1 %vm274_vm1, %v4955_v63 }
 0x1a6   : > { %v4508_v26 = vadd.f32 %v1479_v33, %v1249_v62  ;;  %3303 = vmatmul.msk.f32.gmra.mxu2 %vm274_vm1, %v4066_v48  ;;  %v4967_v48 = vld [vmem:[#allocation12_spill] sm:$0xff] }
 0x1a7   : > { %3369 = vmatmul.msk.f32.gmra.mxu3 %vm274_vm1, %v3335_v13  ;;  %v3337_v13 = vld [vmem:[%s3716_s20 + $0xe2] sm:$0xff] }
 0x1a8   : > { %3435 = vmatmul.msk.f32.gmra.mxu0 %vm274_vm1, %v4142_v8 }
 0x1a9   : > { %v925_v5 = vpop.f32.mrf.mxu2 }
 0x1aa   : > { %v971_v53 = vadd.f32 %v925_v5, %v680_v20  ;;  %v1204_v54 = vpop.f32.mrf.mxu3  ;;  %v682_v4 = vpop.f32.mrf.mxu1 }
 0x1ab   : > { %v683_v63 = vadd.f32 %v682_v4, %v4967_v48 }
 0x1ac   : > { %v1250_v33 = vadd.f32 %v1204_v54, %v971_v53 }
 0x1ad   : > { %v1485_v9 = vpop.f32.mrf.mxu0  ;;  %3238 = vmatmul.msk.f32.gmra.mxu1 %vm274_vm1, %v4958_v60 }
 0x1ae   : > { %v4519_v55 = vadd.f32 %v1482_v58, %v1250_v33  ;;  %3304 = vmatmul.msk.f32.gmra.mxu2 %vm274_vm1, %v4088_v45  ;;  %v4968_v45 = vld [vmem:[#allocation14_spill] sm:$0xff] }
 0x1af   : > { %3370 = vmatmul.msk.f32.gmra.mxu3 %vm274_vm1, %v3336_v31  ;;  %v3338_v33 = vld [vmem:[%s3716_s20 + $0xf2] sm:$0xff] }
 0x1b0   : > { %3436 = vmatmul.msk.f32.gmra.mxu0 %vm274_vm1, %v4159_v43 }
 0x1b1   : > { %v928_v56 = vpop.f32.mrf.mxu2 }
 0x1b2   : > { %v972_v16 = vadd.f32 %v928_v56, %v683_v63  ;;  %v1207_v51 = vpop.f32.mrf.mxu3  ;;  %v685_v21 = vpop.f32.mrf.mxu1 }
 0x1b3   : > { %v686_v60 = vadd.f32 %v685_v21, %v4968_v45  ;;  %v3339_v21 = vld [vmem:[%s3716_s20 + $0xfa] sm:$0xff] }
 0x1b4   : > { %v1251_v62 = vadd.f32 %v1207_v51, %v972_v16 }
 0x1b5   : > { %v1488_v58 = vpop.f32.mrf.mxu0  ;;  %3239 = vmatmul.msk.f32.gmra.mxu1 %vm274_vm1, %v4961_v30 }
 0x1b6   : > { %v4530_v59 = vadd.f32 %v1485_v9, %v1251_v62  ;;  %3305 = vmatmul.msk.f32.gmra.mxu2 %vm274_vm1, %v4110_v2  ;;  %v4969_v2 = vld [vmem:[#allocation18_spill] sm:$0xff] }
 0x1b7   : > { %3371 = vmatmul.msk.f32.gmra.mxu3 %vm274_vm1, %v3337_v13 }
 0x1b8   : > { %3437 = vmatmul.msk.f32.gmra.mxu0 %vm274_vm1, %v4176_v0 }
 0x1b9   : > { %v931_v20 = vpop.f32.mrf.mxu2 }
 0x1ba   : > { %v973_v5 = vadd.f32 %v931_v20, %v686_v60  ;;  %v1210_v53 = vpop.f32.mrf.mxu3  ;;  %v688_v54 = vpop.f32.mrf.mxu1 }
 0x1bb   : > { %v689_v30 = vadd.f32 %v688_v54, %v4969_v2 }
 0x1bc   : > { %v1252_v4 = vadd.f32 %v1210_v53, %v973_v5  ;;  %v3340_v53 = vld [vmem:[%s3716_s20 + $0x10a] sm:$0xff] }
 0x1bd   : > { %v1491_v31 = vpop.f32.mrf.mxu0  ;;  %3240 = vmatmul.msk.f32.gmra.mxu1 %vm274_vm1, %v4964_v27 }
 0x1be   : > { %v4541_v9 = vadd.f32 %v1488_v58, %v1252_v4  ;;  %3306 = vmatmul.msk.f32.gmra.mxu2 %vm274_vm1, %v4130_v6  ;;  %v4970_v6 = vld [vmem:[#allocation21_spill] sm:$0xff] }
 0x1bf   : > { %3372 = vmatmul.msk.f32.gmra.mxu3 %vm274_vm1, %v3338_v33 }
 0x1c0   : > { %3438 = vmatmul.msk.f32.gmra.mxu0 %vm274_vm1, %v4193_v12 }
 0x1c1   : > { %v934_v48 = vpop.f32.mrf.mxu2 }
 0x1c2   : > { %v974_v63 = vadd.f32 %v934_v48, %v689_v30  ;;  %v1213_v56 = vpop.f32.mrf.mxu3  ;;  %v691_v16 = vpop.f32.mrf.mxu1 }
 0x1c3   : > { %v692_v27 = vadd.f32 %v691_v16, %v4970_v6 }
 0x1c4   : > { %v1253_v51 = vadd.f32 %v1213_v56, %v974_v63  ;;  %v3341_v63 = vld [vmem:[%s3716_s20 + $0x112] sm:$0xff] }
 0x1c5   : > { %v1494_v62 = vpop.f32.mrf.mxu0  ;;  %3241 = vmatmul.msk.f32.gmra.mxu1 %vm274_vm1, %v4142_v8  ;;  %v4971_v8 = vld [vmem:[#allocation24_spill] sm:$0xff] }
 0x1c6   : > { %v4552_v13 = vadd.f32 %v1491_v31, %v1253_v51  ;;  %3307 = vmatmul.msk.f32.gmra.mxu2 %vm274_vm1, %v4145_v37 }
 0x1c7   : > { %3373 = vmatmul.msk.f32.gmra.mxu3 %vm274_vm1, %v3339_v21 }
 0x1c8   : > { %3439 = vmatmul.msk.f32.gmra.mxu0 %vm274_vm1, %v4210_v25 }
 0x1c9   : > { %v937_v58 = vpop.f32.mrf.mxu2 }
 0x1ca   : > { %v975_v45 = vadd.f32 %v937_v58, %v692_v27  ;;  %v1216_v60 = vpop.f32.mrf.mxu3  ;;  %v694_v20 = vpop.f32.mrf.mxu1  ;;  %v3342_v58 = vld [vmem:[%s3716_s20 + $0x122] sm:$0xff] }
 0x1cb   : > { %v695_v37 = vadd.f32 %v694_v20, %v4971_v8 }
 0x1cc   : > { %v1254_v5 = vadd.f32 %v1216_v60, %v975_v45 }
 0x1cd   : > { %v1497_v54 = vpop.f32.mrf.mxu0  ;;  %3242 = vmatmul.msk.f32.gmra.mxu1 %vm274_vm1, %v4159_v43  ;;  %v4972_v43 = vld [vmem:[#allocation27_spill] sm:$0xff] }
 0x1ce   : > { %v4563_v4 = vadd.f32 %v1494_v62, %v1254_v5  ;;  %3308 = vmatmul.msk.f32.gmra.mxu2 %vm274_vm1, %v4162_v14 }
 0x1cf   : > { %3374 = vmatmul.msk.f32.gmra.mxu3 %vm274_vm1, %v3340_v53 }
 0x1d0   : > { %3440 = vmatmul.msk.f32.gmra.mxu0 %vm274_vm1, %v4227_v36 }
 0x1d1   : > { %v940_v33 = vpop.f32.mrf.mxu2 }
 0x1d2   : > { %v976_v31 = vadd.f32 %v940_v33, %v695_v37  ;;  %v1219_v2 = vpop.f32.mrf.mxu3  ;;  %v697_v30 = vpop.f32.mrf.mxu1 }
 0x1d3   : > { %v698_v14 = vadd.f32 %v697_v30, %v4972_v43 }
 0x1d4   : > { %v1255_v48 = vadd.f32 %v1219_v2, %v976_v31  ;;  %v4974_v31 = vld [vmem:[#allocation30_spill] sm:$0xff] }
 0x1d5   : > { %v1500_v56 = vpop.f32.mrf.mxu0  ;;  %3243 = vmatmul.msk.f32.gmra.mxu1 %vm274_vm1, %v4176_v0 }
 0x1d6   : > { %v4574_v16 = vadd.f32 %v1497_v54, %v1255_v48  ;;  %3309 = vmatmul.msk.f32.gmra.mxu2 %vm274_vm1, %v4179_v50  ;;  %v4973_v50 = vld [vmem:[#allocation29_spill] sm:$0xff] }
 0x1d7   : > { %3375 = vmatmul.msk.f32.gmra.mxu3 %vm274_vm1, %v3341_v63 }
 0x1d8   : > { %3441 = vmatmul.msk.f32.gmra.mxu0 %vm274_vm1, %v4244_v44 }
 0x1d9   : > { %v943_v51 = vpop.f32.mrf.mxu2 }
 0x1da   : > { %v977_v21 = vadd.f32 %v943_v51, %v698_v14  ;;  %v1222_v62 = vpop.f32.mrf.mxu3  ;;  %v1685_v6 = vpop.f32.mrf.mxu1 }
 0x1db   : > { %v1781_v60 = vadd.f32 %v1685_v6, %v4973_v50 }
 0x1dc   : > { %v1256_v27 = vadd.f32 %v1222_v62, %v977_v21  ;;  %v4975_v21 = vld [vmem:[#allocation31_spill] sm:$0xff] }
 0x1dd   : > { %v2520_v45 = vpop.f32.mrf.mxu0  ;;  %3244 = vmatmul.msk.f32.gmra.mxu1 %vm274_vm1, %v4193_v12  ;;  %v4602_v12 = vld [vmem:[%s4884_s2] ss:$0 sm:$0xff] }
 0x1de   : > { %v4585_v0 = vadd.f32 %v1500_v56, %v1256_v27  ;;  %3310 = vmatmul.msk.f32.gmra.mxu2 %vm274_vm1, %v4196_v22  ;;  %v3343_v22 = vld [vmem:[%s3716_s20 + $0x12a] sm:$0xff] }
 0x1df   : > { %3376 = vmatmul.msk.f32.gmra.mxu3 %vm274_vm1, %v3342_v58 }
 0x1e0   : > { %3442 = vmatmul.msk.f32.gmra.mxu0 %vm274_vm1, %v4261_v49 }
 0x1e1   : > { %v1964_v20 = vpop.f32.mrf.mxu2 }
 0x1e2   : > { %v2060_v5 = vadd.f32 %v1964_v20, %v1781_v60  ;;  %v2242_v53 = vpop.f32.mrf.mxu3  ;;  %v1688_v54 = vpop.f32.mrf.mxu1 }
 0x1e3   : > { %v1782_v2 = vadd.f32 %v1688_v54, %v4974_v31 }
 0x1e4   : > { %v2338_v8 = vadd.f32 %v2242_v53, %v2060_v5  ;;  %v3345_v53 = vld [vmem:[%s3716_s20 + $0x142] sm:$0xff] }
 0x1e5   : > { %v2523_v37 = vpop.f32.mrf.mxu0  ;;  %3245 = vmatmul.msk.f32.gmra.mxu1 %vm274_vm1, %v4210_v25 }
 0x1e6   : > { %v2616_v33 = vadd.f32 %v2520_v45, %v2338_v8  ;;  %3311 = vmatmul.msk.f32.gmra.mxu2 %vm274_vm1, %v4213_v29  ;;  %v3344_v29 = vld [vmem:[%s3716_s20 + $0x13a] sm:$0xff] }
 0x1e7   : > { %3377 = vmatmul.msk.f32.gmra.mxu3 %vm274_vm1, %v3343_v22  ;;  %v4976_v22 = vld [vmem:[#allocation39_spill] sm:$0xff] }
 0x1e8   : > { %3443 = vmatmul.msk.f32.gmra.mxu0 %vm274_vm1, %v4278_v40  ;;  %v2652_v30 = vadd.f32 %v4602_v12, %v2616_v33 }
 0x1e9   : > { %v1967_v48 = vpop.f32.mrf.mxu2 }
 0x1ea   : > { %2684 = vst [vmem:[%s4614_s11] sm:$0xff] %v2652_v30  ;;  %v2061_v63 = vadd.f32 %v1967_v48, %v1782_v2  ;;  %v2245_v25 = vpop.f32.mrf.mxu3  ;;  %v1691_v56 = vpop.f32.mrf.mxu1  ;;  %v2754_v58 = vmul.f32 %v2652_v30, %v2652_v30 }
 0x1eb   : > { %v1783_v62 = vadd.f32 %v1691_v56, %v4975_v21 }
 0x1ec   : > { %v2339_v43 = vadd.f32 %v2245_v25, %v2061_v63 }
 0x1ed   : > { %v2526_v14 = vpop.f32.mrf.mxu0  ;;  %3246 = vmatmul.msk.f32.gmra.mxu1 %vm274_vm1, %v4227_v36 }
 0x1ee   : > { %v2617_v51 = vadd.f32 %v2523_v37, %v2339_v43  ;;  %3312 = vmatmul.msk.f32.gmra.mxu2 %vm274_vm1, %v4230_v34  ;;  %v4977_v37 = vld [vmem:[#allocation32_spill] sm:$0xff] }
 0x1ef   : > { %3378 = vmatmul.msk.f32.gmra.mxu3 %vm274_vm1, %v3344_v29 }
 0x1f0   : > { %3444 = vmatmul.msk.f32.gmra.mxu0 %vm274_vm1, %v4295_v24  ;;  %v2653_v6 = vadd.f32 %v4602_v12, %v2617_v51  ;;  %v4978_v51 = vld [vmem:[#allocation33_spill] sm:$0xff] }
 0x1f1   : > { %v1970_v27 = vpop.f32.mrf.mxu2 }
 0x1f2   : > { %2685 = vst [vmem:[%s4614_s11 + $0x8] sm:$0xff] %v2653_v6  ;;  %v2716_v45 = vadd.f32 %v2653_v6, %v2652_v30  ;;  %v2755_v50 = vmul.f32 %v2653_v6, %v2653_v6  ;;  %v2062_v36 = vadd.f32 %v1970_v27, %v1783_v62  ;;  %v2248_v60 = vpop.f32.mrf.mxu3  ;;  %v1694_v20 = vpop.f32.mrf.mxu1 }
 0x1f3   : > { %v1784_v33 = vadd.f32 %v1694_v20, %v4977_v37 }
 0x1f4   : > { %v2786_v5 = vadd.f32 %v2755_v50, %v2754_v58  ;;  %v2340_v34 = vadd.f32 %v2248_v60, %v2062_v36 }
 0x1f5   : > { %v2529_v54 = vpop.f32.mrf.mxu0  ;;  %3247 = vmatmul.msk.f32.gmra.mxu1 %vm274_vm1, %v4244_v44 }
 0x1f6   : > { %v2618_v8 = vadd.f32 %v2526_v14, %v2340_v34  ;;  %3313 = vmatmul.msk.f32.gmra.mxu2 %vm274_vm1, %v4247_v38  ;;  %v3346_v38 = vld [vmem:[%s3716_s20 + $0x152] sm:$0xff] }
 0x1f7   : > { %3379 = vmatmul.msk.f32.gmra.mxu3 %vm274_vm1, %v3345_v53  ;;  %v4979_v34 = vld [vmem:[#allocation34_spill] sm:$0xff] }
 0x1f8   : > { %3445 = vmatmul.msk.f32.gmra.mxu0 %vm274_vm1, %v4976_v22  ;;  %v2654_v31 = vadd.f32 %v4602_v12, %v2618_v8 }
 0x1f9   : > { %v1973_v2 = vpop.f32.mrf.mxu2 }
 0x1fa   : > { %2686 = vst [vmem:[%s4614_s11 + $0x10] sm:$0xff] %v2654_v31  ;;  %v2717_v30 = vadd.f32 %v2716_v45, %v2654_v31  ;;  %v2756_v48 = vmul.f32 %v2654_v31, %v2654_v31  ;;  %v2063_v63 = vadd.f32 %v1973_v2, %v1784_v33  ;;  %v2251_v25 = vpop.f32.mrf.mxu3  ;;  %v1697_v44 = vpop.f32.mrf.mxu1 }
 0x1fb   : > { %v1785_v21 = vadd.f32 %v1697_v44, %v4978_v51  ;;  %v4980_v44 = vld [vmem:[#allocation47_spill] sm:$0xff] }
 0x1fc   : > { %v2787_v56 = vadd.f32 %v2786_v5, %v2756_v48  ;;  %v2341_v43 = vadd.f32 %v2251_v25, %v2063_v63 }
 0x1fd   : > { %v2532_v29 = vpop.f32.mrf.mxu0  ;;  %3248 = vmatmul.msk.f32.gmra.mxu1 %vm274_vm1, %v4261_v49 }
 0x1fe   : > { %v2619_v14 = vadd.f32 %v2529_v54, %v2341_v43  ;;  %3314 = vmatmul.msk.f32.gmra.mxu2 %vm274_vm1, %v4264_v7  ;;  %v3347_v7 = vld [vmem:[%s3716_s20 + $0x15a] sm:$0xff] }
 0x1ff   : > { %3380 = vmatmul.msk.f32.gmra.mxu3 %vm274_vm1, %v3346_v38 }
 0x200   : > { %3446 = vmatmul.msk.f32.gmra.mxu0 %vm274_vm1, %v4329_v17  ;;  %v2655_v62 = vadd.f32 %v4602_v12, %v2619_v14 }
 0x201   : > { %v1976_v6 = vpop.f32.mrf.mxu2 }
 0x202   : > { %2687 = vst [vmem:[%s4614_s11 + $0x18] sm:$0xff] %v2655_v62  ;;  %v2718_v27 = vadd.f32 %v2717_v30, %v2655_v62  ;;  %v2757_v58 = vmul.f32 %v2655_v62, %v2655_v62  ;;  %v2064_v45 = vadd.f32 %v1976_v6, %v1785_v21  ;;  %v2254_v50 = vpop.f32.mrf.mxu3  ;;  %v1700_v49 = vpop.f32.mrf.mxu1 }
 0x203   : > { %v1786_v53 = vadd.f32 %v1700_v49, %v4979_v34 }
 0x204   : > { %v2788_v36 = vadd.f32 %v2787_v56, %v2757_v58  ;;  %v2342_v60 = vadd.f32 %v2254_v50, %v2064_v45  ;;  %v4981_v56 = vld [vmem:[#allocation35_spill] sm:$0xff]  ;;  %v4982_v50 = vld [vmem:[#allocation36_spill] sm:$0xff] }
 0x205   : > { %v2535_v20 = vpop.f32.mrf.mxu0  ;;  %3249 = vmatmul.msk.f32.gmra.mxu1 %vm274_vm1, %v4278_v40 }
 0x206   : > { %v2620_v5 = vadd.f32 %v2532_v29, %v2342_v60  ;;  %3315 = vmatmul.msk.f32.gmra.mxu2 %vm274_vm1, %v4281_v11  ;;  %v3348_v11 = vld [vmem:[%s3716_s20 + $0x16a] sm:$0xff] }
 0x207   : > { %3381 = vmatmul.msk.f32.gmra.mxu3 %vm274_vm1, %v3347_v7 }
 0x208   : > { %3447 = vmatmul.msk.f32.gmra.mxu0 %vm274_vm1, %v4349_v47  ;;  %v2656_v54 = vadd.f32 %v4602_v12, %v2620_v5 }
 0x209   : > { %v1979_v8 = vpop.f32.mrf.mxu2 }
 0x20a   : > { %2688 = vst [vmem:[%s4614_s11 + $0x20] sm:$0xff] %v2656_v54  ;;  %v2719_v37 = vadd.f32 %v2718_v27, %v2656_v54  ;;  %v2758_v33 = vmul.f32 %v2656_v54, %v2656_v54  ;;  %v2065_v31 = vadd.f32 %v1979_v8, %v1786_v53  ;;  %v2257_v2 = vpop.f32.mrf.mxu3  ;;  %v1703_v40 = vpop.f32.mrf.mxu1  ;;  %v4684_v8 = vld [vmem:[%s3716_s20 + $0x184] sm:$0xff] }
 0x20b   : > { %v1787_v43 = vadd.f32 %v1703_v40, %v4981_v56 }
 0x20c   : > { %v2789_v30 = vadd.f32 %v2788_v36, %v2758_v33  ;;  %v2343_v48 = vadd.f32 %v2257_v2, %v2065_v31  ;;  %v4983_v33 = vld [vmem:[#allocation41_spill] sm:$0xff]  ;;  %v4984_v31 = vld [vmem:[#allocation42_spill] sm:$0xff] }
 0x20d   : > { %v2538_v63 = vpop.f32.mrf.mxu0  ;;  %3250 = vmatmul.msk.f32.gmra.mxu1 %vm274_vm1, %v4295_v24  ;;  %v4985_v2 = vld [vmem:[#allocation37_spill] sm:$0xff] }
 0x20e   : > { %v2621_v25 = vadd.f32 %v2535_v20, %v2343_v48  ;;  %3316 = vmatmul.msk.f32.gmra.mxu2 %vm274_vm1, %v4298_v15  ;;  %v3349_v15 = vld [vmem:[%s3716_s20 + $0x172] sm:$0xff] }
 0x20f   : > { %3382 = vmatmul.msk.f32.gmra.mxu3 %vm274_vm1, %v3348_v11 }
 0x210   : > { %3448 = vmatmul.msk.f32.gmra.mxu0 %vm274_vm1, %v4980_v44  ;;  %v2657_v38 = vadd.f32 %v4602_v12, %v2621_v25 }
 0x211   : > { %v1982_v29 = vpop.f32.mrf.mxu2 }
 0x212   : > { %2689 = vst [vmem:[%s4614_s11 + $0x28] sm:$0xff] %v2657_v38  ;;  %v2720_v14 = vadd.f32 %v2719_v37, %v2657_v38  ;;  %v2759_v51 = vmul.f32 %v2657_v38, %v2657_v38  ;;  %v2066_v21 = vadd.f32 %v1982_v29, %v1787_v43  ;;  %v2260_v62 = vpop.f32.mrf.mxu3  ;;  %v1706_v24 = vpop.f32.mrf.mxu1 }
 0x213   : > { %v1788_v49 = vadd.f32 %v1706_v24, %v4982_v50  ;;  %v4988_v24 = vld [vmem:[#allocation38_spill] sm:$0xff] }
 0x214   : > { %v2790_v6 = vadd.f32 %v2789_v30, %v2759_v51  ;;  %v2344_v27 = vadd.f32 %v2260_v62, %v2066_v21  ;;  %v4986_v21 = vld [vmem:[#allocation44_spill] sm:$0xff]  ;;  %v4987_v62 = vld [vmem:[#allocation45_spill] sm:$0xff] }
 0x215   : > { %v2541_v58 = vpop.f32.mrf.mxu0  ;;  %3251 = vmatmul.msk.f32.gmra.mxu1 %vm274_vm1, %v4976_v22 }
 0x216   : > { %v2622_v45 = vadd.f32 %v2538_v63, %v2344_v27  ;;  %3317 = vmatmul.msk.f32.gmra.mxu2 %vm274_vm1, %v4315_v19 }
 0x217   : > { %3383 = vmatmul.msk.f32.gmra.mxu3 %vm274_vm1, %v3349_v15 }
 0x218   : > { %3449 = vmatmul.msk.f32.gmra.mxu0 %vm274_vm1, %v4389_v52  ;;  %v2658_v36 = vadd.f32 %v4602_v12, %v2622_v45 }
 0x219   : > { %v1985_v60 = vpop.f32.mrf.mxu2 }
 0x21a   : > { %2690 = vst [vmem:[%s4614_s11 + $0x30] sm:$0xff] %v2658_v36  ;;  %v2721_v7 = vadd.f32 %v2720_v14, %v2658_v36  ;;  %v2760_v20 = vmul.f32 %v2658_v36, %v2658_v36  ;;  %v2067_v5 = vadd.f32 %v1985_v60, %v1788_v49  ;;  %v2263_v22 = vpop.f32.mrf.mxu3  ;;  %v1709_v34 = vpop.f32.mrf.mxu1  ;;  %v4698_v14 = vld [vmem:[%s3716_s20 + $0x18c] sm:$0xff] }
 0x21b   : > { %v1789_v40 = vadd.f32 %v1709_v34, %v4985_v2 }
 0x21c   : > { %v2791_v53 = vadd.f32 %v2790_v6, %v2760_v20  ;;  %v2345_v54 = vadd.f32 %v2263_v22, %v2067_v5  ;;  %v4712_v20 = vld [vmem:[%s3716_s20 + $0x19c] sm:$0xff]  ;;  %v4989_v22 = vld [vmem:[#allocation40_spill] sm:$0xff] }
 0x21d   : > { %v2544_v19 = vpop.f32.mrf.mxu0  ;;  %3252 = vmatmul.msk.f32.gmra.mxu1 %vm274_vm1, %v4329_v17 }
 0x21e   : > { %v2623_v37 = vadd.f32 %v2541_v58, %v2345_v54  ;;  %3318 = vmatmul.msk.f32.gmra.mxu2 %vm274_vm1, %v4983_v33 }
 0x21f   : > { %3384 = vmatmul.msk.f32.gmra.mxu3 %vm274_vm1, %v4984_v31 }
 0x220   : > { %3450 = vmatmul.msk.f32.gmra.mxu0 %vm274_vm1, %v4684_v8  ;;  %v2659_v30 = vadd.f32 %v4602_v12, %v2623_v37 }
 0x221   : > { %v1988_v48 = vpop.f32.mrf.mxu2 }
 0x222   : > { %2691 = vst [vmem:[%s4614_s11 + $0x38] sm:$0xff] %v2659_v30  ;;  %v2722_v11 = vadd.f32 %v2721_v7, %v2659_v30  ;;  %v2761_v63 = vmul.f32 %v2659_v30, %v2659_v30  ;;  %v2068_v17 = vadd.f32 %v1988_v48, %v1789_v40  ;;  %v2266_v25 = vpop.f32.mrf.mxu3  ;;  %v1712_v56 = vpop.f32.mrf.mxu1  ;;  %v4990_v48 = vld [vmem:[#allocation43_spill] sm:$0xff] }
 0x223   : > { %v1790_v6 = vadd.f32 %v1712_v56, %v4988_v24 }
 0x224   : > { %v2792_v43 = vadd.f32 %v2791_v53, %v2761_v63  ;;  %v2346_v38 = vadd.f32 %v2266_v25, %v2068_v17 }
 0x225   : > { %v2547_v29 = vpop.f32.mrf.mxu0  ;;  %3253 = vmatmul.msk.f32.gmra.mxu1 %vm274_vm1, %v4349_v47 }
 0x226   : > { %v2624_v51 = vadd.f32 %v2544_v19, %v2346_v38  ;;  %3319 = vmatmul.msk.f32.gmra.mxu2 %vm274_vm1, %v4986_v21 }
 0x227   : > { %3385 = vmatmul.msk.f32.gmra.mxu3 %vm274_vm1, %v4987_v62  ;;  %v3420_v62 = vld [vmem:[%s3716_s20 + $0x1b4] sm:$0xff] }
 0x228   : > { %3451 = vmatmul.msk.f32.gmra.mxu0 %vm274_vm1, %v4698_v14  ;;  %v2660_v27 = vadd.f32 %v4602_v12, %v2624_v51 }
 0x229   : > { %v1991_v15 = vpop.f32.mrf.mxu2 }
 0x22a   : > { %2692 = vst [vmem:[%s4614_s11 + $0x40] sm:$0xff] %v2660_v27  ;;  %v2723_v58 = vadd.f32 %v2722_v11, %v2660_v27  ;;  %v2762_v45 = vmul.f32 %v2660_v27, %v2660_v27  ;;  %v2069_v47 = vadd.f32 %v1991_v15, %v1790_v6  ;;  %v2269_v50 = vpop.f32.mrf.mxu3  ;;  %v1715_v49 = vpop.f32.mrf.mxu1  ;;  %v4991_v6 = vld [vmem:[#allocation46_spill] sm:$0xff] }
 0x22b   : > { %v1791_v34 = vadd.f32 %v1715_v49, %v4989_v22 }
 0x22c   : > { %v2793_v36 = vadd.f32 %v2792_v43, %v2762_v45  ;;  %v2347_v60 = vadd.f32 %v2269_v50, %v2069_v47 }
 0x22d   : > { %v2550_v7 = vpop.f32.mrf.mxu0  ;;  %3254 = vmatmul.msk.f32.gmra.mxu1 %vm274_vm1, %v4980_v44 }
 0x22e   : > { %v2625_v5 = vadd.f32 %v2547_v29, %v2347_v60  ;;  %3320 = vmatmul.msk.f32.gmra.mxu2 %vm274_vm1, %v4372_v18 }
 0x22f   : > { %3386 = vmatmul.msk.f32.gmra.mxu3 %vm274_vm1, %v4375_v42  ;;  %v4726_v42 = vld [vmem:[%s3716_s20 + $0x1a4] sm:$0xff] }
 0x230   : > { %3452 = vmatmul.msk.f32.gmra.mxu0 %vm274_vm1, %v4712_v20  ;;  %v2661_v53 = vadd.f32 %v4602_v12, %v2625_v5  ;;  %v3355_v5 = vld [vmem:[%s3716_s20 + $0x1ba] sm:$0xff] }
 0x231   : > { %v1994_v54 = vpop.f32.mrf.mxu2 }
 0x232   : > { %2693 = vst [vmem:[%s4614_s11 + $0x48] sm:$0xff] %v2661_v53  ;;  %v2724_v19 = vadd.f32 %v2723_v58, %v2661_v53  ;;  %v2763_v37 = vmul.f32 %v2661_v53, %v2661_v53  ;;  %v2070_v44 = vadd.f32 %v1994_v54, %v1791_v34  ;;  %v2272_v33 = vpop.f32.mrf.mxu3  ;;  %v1718_v31 = vpop.f32.mrf.mxu1  ;;  %v3421_v34 = vld [vmem:[%s3716_s20 + $0x1bc] sm:$0xff]  ;;  %v4992_v54 = vld [vmem:[#allocation48_spill] sm:$0xff] }
 0x233   : > { %v1792_v11 = vadd.f32 %v1718_v31, %v4990_v48 }
 0x234   : > { %v2794_v2 = vadd.f32 %v2793_v36, %v2763_v37  ;;  %v2348_v18 = vadd.f32 %v2272_v33, %v2070_v44  ;;  %v3289_v36 = vld [vmem:[%s3716_s20 + $0x1b8] sm:$0xff] }
 0x235   : > { %v2553_v40 = vpop.f32.mrf.mxu0  ;;  %3255 = vmatmul.msk.f32.gmra.mxu1 %vm274_vm1, %v4389_v52 }
 0x236   : > { %v2626_v30 = vadd.f32 %v2550_v7, %v2348_v18  ;;  %3321 = vmatmul.msk.f32.gmra.mxu2 %vm274_vm1, %v4392_v35  ;;  %v3288_v35 = vld [vmem:[%s3716_s20 + $0x1b0] sm:$0xff] }
 0x237   : > { %3387 = vmatmul.msk.f32.gmra.mxu3 %vm274_vm1, %v4395_v61  ;;  %v3354_v61 = vld [vmem:[%s3716_s20 + $0x1b2] sm:$0xff] }
 0x238   : > { %3453 = vmatmul.msk.f32.gmra.mxu0 %vm274_vm1, %v4726_v42  ;;  %v2662_v63 = vadd.f32 %v4602_v12, %v2626_v30 }
 0x239   : > { %v1997_v17 = vpop.f32.mrf.mxu2 }
 0x23a   : > { %2694 = vst [vmem:[%s4614_s11 + $0x50] sm:$0xff] %v2662_v63  ;;  %v2725_v25 = vadd.f32 %v2724_v19, %v2662_v63  ;;  %v2764_v56 = vmul.f32 %v2662_v63, %v2662_v63  ;;  %v2071_v52 = vadd.f32 %v1997_v17, %v1792_v11  ;;  %v2275_v43 = vpop.f32.mrf.mxu3  ;;  %v1721_v38 = vpop.f32.mrf.mxu1  ;;  %v3356_v11 = vld [vmem:[%s3716_s20 + $0x1ca] sm:$0xff] }
 0x23b   : > { %v1793_v27 = vadd.f32 %v1721_v38, %v4991_v6  ;;  %v3422_v17 = vld [vmem:[%s3716_s20 + $0x1cc] sm:$0xff] }
 0x23c   : > { %v2795_v29 = vadd.f32 %v2794_v2, %v2764_v56  ;;  %v2349_v51 = vadd.f32 %v2275_v43, %v2071_v52 }
 0x23d   : > { %v2556_v21 = vpop.f32.mrf.mxu0  ;;  %3256 = vmatmul.msk.f32.gmra.mxu1 %vm274_vm1, %v4684_v8 }
 0x23e   : > { %v2627_v24 = vadd.f32 %v2553_v40, %v2349_v51  ;;  %3322 = vmatmul.msk.f32.gmra.mxu2 %vm274_vm1, %v3288_v35  ;;  %v3290_v40 = vld [vmem:[%s3716_s20 + $0x1c8] sm:$0xff] }
 0x23f   : > { %3388 = vmatmul.msk.f32.gmra.mxu3 %vm274_vm1, %v3354_v61  ;;  %v3291_v61 = vld [vmem:[%s3716_s20 + $0x1d0] sm:$0xff] }
 0x240   : > { %3454 = vmatmul.msk.f32.gmra.mxu0 %vm274_vm1, %v3420_v62  ;;  %v2663_v15 = vadd.f32 %v4602_v12, %v2627_v24  ;;  %v3357_v24 = vld [vmem:[%s3716_s20 + $0x1d2] sm:$0xff] }
 0x241   : > { %v2000_v58 = vpop.f32.mrf.mxu2 }
 0x242   : > { %2695 = vst [vmem:[%s4614_s11 + $0x58] sm:$0xff] %v2663_v15  ;;  %v2726_v45 = vadd.f32 %v2725_v25, %v2663_v15  ;;  %v2765_v47 = vmul.f32 %v2663_v15, %v2663_v15  ;;  %v2072_v50 = vadd.f32 %v2000_v58, %v1793_v27  ;;  %v2278_v49 = vpop.f32.mrf.mxu3  ;;  %v1724_v8 = vpop.f32.mrf.mxu1  ;;  %v3423_v27 = vld [vmem:[%s3716_s20 + $0x1d4] sm:$0xff]  ;;  %s2841_s20 = scalar_lea.hbm %s4885_s3, %s3465_s12 }
 0x243   : > { %v1794_v19 = vadd.f32 %v1724_v8, %v4992_v54  ;;  %s2844_s23 = sshll.u32 %s2841_s20, 4  ;;  %s2845_s23 = int_to_ptr.hbm [resolvable:$true] %s2844_s23 }
 0x244   : > { %v2796_v60 = vadd.f32 %v2795_v29, %v2765_v47  ;;  %v2350_v7 = vadd.f32 %v2278_v49, %v2072_v50  ;;  %s3531_s28 = sshra.s32 %s2845_s23, 4  ;;  %s3532_s28 = int_to_ptr.hbm [resolvable:$true] %s3531_s28 }
 0x245   : > { %v2559_v22 = vpop.f32.mrf.mxu0  ;;  %3257 = vmatmul.msk.f32.gmra.mxu1 %vm274_vm1, %v4698_v14  ;;  %s3533_s29 = scalar_lea.hbm %s3532_s28, 256  ;;  %p3538_p0 = scmp.lt.s32.totalorder %s3532_s28, %s4885_s3 }
 0x246   : > { %v2628_v53 = vadd.f32 %v2556_v21, %v2350_v7  ;;  %3323 = vmatmul.msk.f32.gmra.mxu2 %vm274_vm1, %v3289_v36  ;;  %p3534_p11 = scmp.ne.s32.totalorder %s3532_s28, %s3533_s29  ;;  %p3539_p1 = scmp.lt.s32.totalorder %s3537_s6, %s3533_s29 }
 0x247   : > { %3389 = vmatmul.msk.f32.gmra.mxu3 %vm274_vm1, %v3355_v5 }
 0x248   : > { %3455 = vmatmul.msk.f32.gmra.mxu0 %vm274_vm1, %v3421_v34  ;;  %v2664_v37 = vadd.f32 %v4602_v12, %v2628_v53  ;;  %p3535_p12 = pnand %p3534_p11, %p3678_p5  ;;  %p3540_p2 = por %p3539_p1, %p3538_p0 }
 0x249   : > { %v2003_v44 = vpop.f32.mrf.mxu2 }
 0x24a   : > { %2696 = vst [vmem:[%s4614_s11 + $0x60] sm:$0xff] %v2664_v37  ;;  %v2727_v33 = vadd.f32 %v2726_v45, %v2664_v37  ;;  %v2766_v31 = vmul.f32 %v2664_v37, %v2664_v37  ;;  %v2073_v2 = vadd.f32 %v2003_v44, %v1794_v19  ;;  %v2281_v18 = vpop.f32.mrf.mxu3  ;;  %v1727_v14 = vpop.f32.mrf.mxu1  ;;  %p3536_p13 = pneg %p3535_p12 }
 0x24b   : > { %v1795_v56 = vadd.f32 %v1727_v14, %v4397_v32 }
 0x24c   : > { %v2797_v30 = vadd.f32 %v2796_v60, %v2766_v31  ;;  %v2351_v48 = vadd.f32 %v2281_v18, %v2073_v2  ;;  %p3541_p3 = pnand %p3540_p2, %p3536_p13 }
 0x24d   : > { %v2562_v63 = vpop.f32.mrf.mxu0  ;;  %3258 = vmatmul.msk.f32.gmra.mxu1 %vm274_vm1, %v4712_v20 }
 0x24e   : > { %v2629_v25 = vadd.f32 %v2559_v22, %v2351_v48  ;;  %3324 = vmatmul.msk.f32.gmra.mxu2 %vm274_vm1, %v3290_v40 }
 0x24f   : > { %3390 = vmatmul.msk.f32.gmra.mxu3 %vm274_vm1, %v3356_v11 }
 0x250   : > { %3456 = vmatmul.msk.f32.gmra.mxu0 %vm274_vm1, %v3422_v17  ;;  %v2665_v52 = vadd.f32 %v4602_v12, %v2629_v25 }
 0x251   : > { %v2006_v43 = vpop.f32.mrf.mxu2 }
 0x252   : > { %2697 = vst [vmem:[%s4614_s11 + $0x68] sm:$0xff] %v2665_v52  ;;  %v2728_v38 = vadd.f32 %v2727_v33, %v2665_v52  ;;  %v2767_v35 = vmul.f32 %v2665_v52, %v2665_v52  ;;  %v2074_v29 = vadd.f32 %v2006_v43, %v1795_v56  ;;  %v2284_v51 = vpop.f32.mrf.mxu3  ;;  %v1730_v20 = vpop.f32.mrf.mxu1 }
 0x253   : > { %v1796_v32 = vadd.f32 %v1730_v20, %v4408_v28 }
 0x254   : > { %v2798_v21 = vadd.f32 %v2797_v30, %v2767_v35  ;;  %v2352_v62 = vadd.f32 %v2284_v51, %v2074_v29 }
 0x255   : > { %v2565_v6 = vpop.f32.mrf.mxu0  ;;  %3259 = vmatmul.msk.f32.gmra.mxu1 %vm274_vm1, %v4726_v42 }
 0x256   : > { %v2630_v15 = vadd.f32 %v2562_v63, %v2352_v62  ;;  %3325 = vmatmul.msk.f32.gmra.mxu2 %vm274_vm1, %v3291_v61 }
 0x257   : > { %3391 = vmatmul.msk.f32.gmra.mxu3 %vm274_vm1, %v3357_v24 }
 0x258   : > { %3457 = vmatmul.msk.f32.gmra.mxu0 %vm274_vm1, %v3423_v27  ;;  %v2666_v58 = vadd.f32 %v4602_v12, %v2630_v15 }
 0x259   : > { %v2009_v45 = vpop.f32.mrf.mxu2 }
 0x25a   : > { %2698 = vst [vmem:[%s4614_s11 + $0x70] sm:$0xff] %v2666_v58  ;;  %v2729_v47 = vadd.f32 %v2728_v38, %v2666_v58  ;;  %v2768_v50 = vmul.f32 %v2666_v58, %v2666_v58  ;;  %v2075_v49 = vadd.f32 %v2009_v45, %v1796_v32  ;;  %v2287_v8 = vpop.f32.mrf.mxu3  ;;  %v1733_v36 = vpop.f32.mrf.mxu1 }
 0x25b   : > { %v1797_v22 = vadd.f32 %v1733_v36, %v4419_v23 }
 0x25c   : > { %v2799_v60 = vadd.f32 %v2798_v21, %v2768_v50  ;;  %v2353_v42 = vadd.f32 %v2287_v8, %v2075_v49 }
 0x25d   : > { %v2568_v7 = vpop.f32.mrf.mxu0 }
 0x25e   : > { %v2631_v5 = vadd.f32 %v2565_v6, %v2353_v42 }
 0x260   : > { %v2667_v34 = vadd.f32 %v4602_v12, %v2631_v5 }
 0x261   : > { %v2012_v28 = vpop.f32.mrf.mxu2 }
 0x262   : > { %2699 = vst [vmem:[%s4614_s11 + $0x78] sm:$0xff] %v2667_v34  ;;  %v2730_v53 = vadd.f32 %v2729_v47, %v2667_v34  ;;  %v2769_v54 = vmul.f32 %v2667_v34, %v2667_v34  ;;  %v2076_v19 = vadd.f32 %v2012_v28, %v1797_v22  ;;  %v2290_v37 = vpop.f32.mrf.mxu3  ;;  %v1736_v44 = vpop.f32.mrf.mxu1 }
 0x263   : > { %v1798_v14 = vadd.f32 %v1736_v44, %v4430_v39 }
 0x264   : > { %v2800_v33 = vadd.f32 %v2799_v60, %v2769_v54  ;;  %v2354_v31 = vadd.f32 %v2290_v37, %v2076_v19 }
 0x265   : > { %v2571_v2 = vpop.f32.mrf.mxu0 }
 0x266   : > { %v2632_v18 = vadd.f32 %v2568_v7, %v2354_v31 }
 0x268   : > { %v2668_v40 = vadd.f32 %v4602_v12, %v2632_v18 }
 0x269   : > { %v2015_v23 = vpop.f32.mrf.mxu2 }
 0x26a   : > { %2700 = vst [vmem:[%s4614_s11 + $0x80] sm:$0xff] %v2668_v40  ;;  %v2731_v30 = vadd.f32 %v2730_v53, %v2668_v40  ;;  %v2770_v48 = vmul.f32 %v2668_v40, %v2668_v40  ;;  %v2077_v11 = vadd.f32 %v2015_v23, %v1798_v14  ;;  %v2293_v63 = vpop.f32.mrf.mxu3  ;;  %v1739_v17 = vpop.f32.mrf.mxu1 }
 0x26b   : > { %v1799_v38 = vadd.f32 %v1739_v17, %v4442_v57 }
 0x26c   : > { %v2801_v25 = vadd.f32 %v2800_v33, %v2770_v48  ;;  %v2355_v56 = vadd.f32 %v2293_v63, %v2077_v11 }
 0x26d   : > { %v2574_v52 = vpop.f32.mrf.mxu0 }
 0x26e   : > { %v2633_v43 = vadd.f32 %v2571_v2, %v2355_v56 }
 0x270   : > { %v2669_v35 = vadd.f32 %v4602_v12, %v2633_v43 }
 0x271   : > { %v2018_v39 = vpop.f32.mrf.mxu2 }
 0x272   : > { %2701 = vst [vmem:[%s4614_s11 + $0x88] sm:$0xff] %v2669_v35  ;;  %v2732_v29 = vadd.f32 %v2731_v30, %v2669_v35  ;;  %v2771_v51 = vmul.f32 %v2669_v35, %v2669_v35  ;;  %v2078_v20 = vadd.f32 %v2018_v39, %v1799_v38  ;;  %v2296_v61 = vpop.f32.mrf.mxu3  ;;  %v1742_v21 = vpop.f32.mrf.mxu1 }
 0x273   : > { %v1800_v15 = vadd.f32 %v1742_v21, %v4453_v41 }
 0x274   : > { %v2802_v62 = vadd.f32 %v2801_v25, %v2771_v51  ;;  %v2356_v24 = vadd.f32 %v2296_v61, %v2078_v20 }
 0x275   : > { %v2577_v6 = vpop.f32.mrf.mxu0 }
 0x276   : > { %v2634_v27 = vadd.f32 %v2574_v52, %v2356_v24 }
 0x278   : > { %v2670_v32 = vadd.f32 %v4602_v12, %v2634_v27 }
 0x279   : > { %v2021_v57 = vpop.f32.mrf.mxu2 }
 0x27a   : > { %2702 = vst [vmem:[%s4614_s11 + $0x90] sm:$0xff] %v2670_v32  ;;  %v2733_v58 = vadd.f32 %v2732_v29, %v2670_v32  ;;  %v2772_v45 = vmul.f32 %v2670_v32, %v2670_v32  ;;  %v2079_v47 = vadd.f32 %v2021_v57, %v1800_v15  ;;  %v2299_v50 = vpop.f32.mrf.mxu3  ;;  %v1745_v49 = vpop.f32.mrf.mxu1 }
 0x27b   : > { %v1801_v7 = vadd.f32 %v1745_v49, %v4464_v10 }
 0x27c   : > { %v2803_v8 = vadd.f32 %v2802_v62, %v2772_v45  ;;  %v2357_v36 = vadd.f32 %v2299_v50, %v2079_v47 }
 0x27d   : > { %v2580_v60 = vpop.f32.mrf.mxu0 }
 0x27e   : > { %v2635_v42 = vadd.f32 %v2577_v6, %v2357_v36 }
 0x280   : > { %v2671_v5 = vadd.f32 %v4602_v12, %v2635_v42 }
 0x281   : > { %v2024_v41 = vpop.f32.mrf.mxu2 }
 0x282   : > { %2703 = vst [vmem:[%s4614_s11 + $0x98] sm:$0xff] %v2671_v5  ;;  %v2734_v22 = vadd.f32 %v2733_v58, %v2671_v5  ;;  %v2773_v34 = vmul.f32 %v2671_v5, %v2671_v5  ;;  %v2080_v28 = vadd.f32 %v2024_v41, %v1801_v7  ;;  %v2302_v53 = vpop.f32.mrf.mxu3  ;;  %v1748_v54 = vpop.f32.mrf.mxu1 }
 0x283   : > { %v1802_v31 = vadd.f32 %v1748_v54, %v4475_v1 }
 0x284   : > { %v2804_v19 = vadd.f32 %v2803_v8, %v2773_v34  ;;  %v2358_v37 = vadd.f32 %v2302_v53, %v2080_v28 }
 0x285   : > { %v2583_v44 = vpop.f32.mrf.mxu0 }
 0x286   : > { %v2636_v33 = vadd.f32 %v2580_v60, %v2358_v37 }
 0x288   : > { %v2672_v2 = vadd.f32 %v4602_v12, %v2636_v33 }
 0x289   : > { %v2027_v10 = vpop.f32.mrf.mxu2 }
 0x28a   : > { %2704 = vst [vmem:[%s4614_s11 + $0xa0] sm:$0xff] %v2672_v2  ;;  %v2735_v18 = vadd.f32 %v2734_v22, %v2672_v2  ;;  %v2774_v14 = vmul.f32 %v2672_v2, %v2672_v2  ;;  %v2081_v40 = vadd.f32 %v2027_v10, %v1802_v31  ;;  %v2305_v23 = vpop.f32.mrf.mxu3  ;;  %v1751_v30 = vpop.f32.mrf.mxu1 }
 0x28b   : > { %v1803_v25 = vadd.f32 %v1751_v30, %v4486_v46 }
 0x28c   : > { %v2805_v48 = vadd.f32 %v2804_v19, %v2774_v14  ;;  %v2359_v11 = vadd.f32 %v2305_v23, %v2081_v40 }
 0x28d   : > { %v2586_v63 = vpop.f32.mrf.mxu0 }
 0x28e   : > { %v2637_v17 = vadd.f32 %v2583_v44, %v2359_v11 }
 0x290   : > { %v2673_v56 = vadd.f32 %v4602_v12, %v2637_v17 }
 0x291   : > { %v2030_v1 = vpop.f32.mrf.mxu2 }
 0x292   : > { %2705 = vst [vmem:[%s4614_s11 + $0xa8] sm:$0xff] %v2673_v56  ;;  %v2736_v52 = vadd.f32 %v2735_v18, %v2673_v56  ;;  %v2775_v43 = vmul.f32 %v2673_v56, %v2673_v56  ;;  %v2082_v38 = vadd.f32 %v2030_v1, %v1803_v25  ;;  %v2308_v35 = vpop.f32.mrf.mxu3  ;;  %v1754_v39 = vpop.f32.mrf.mxu1 }
 0x293   : > { %v1804_v21 = vadd.f32 %v1754_v39, %v4497_v3 }
 0x294   : > { %v2806_v29 = vadd.f32 %v2805_v48, %v2775_v43  ;;  %v2360_v51 = vadd.f32 %v2308_v35, %v2082_v38 }
 0x295   : > { %v2589_v20 = vpop.f32.mrf.mxu0 }
 0x296   : > { %v2638_v61 = vadd.f32 %v2586_v63, %v2360_v51 }
 0x298   : > { %v2674_v62 = vadd.f32 %v4602_v12, %v2638_v61 }
 0x299   : > { %v2033_v46 = vpop.f32.mrf.mxu2 }
 0x29a   : > { %2706 = vst [vmem:[%s4614_s11 + $0xb0] sm:$0xff] %v2674_v62  ;;  %v2737_v24 = vadd.f32 %v2736_v52, %v2674_v62  ;;  %v2776_v6 = vmul.f32 %v2674_v62, %v2674_v62  ;;  %v2083_v27 = vadd.f32 %v2033_v46, %v1804_v21  ;;  %v2311_v15 = vpop.f32.mrf.mxu3  ;;  %v1757_v32 = vpop.f32.mrf.mxu1 }
 0x29b   : > { %v1805_v50 = vadd.f32 %v1757_v32, %v4508_v26 }
 0x29c   : > { %v2807_v57 = vadd.f32 %v2806_v29, %v2776_v6  ;;  %v2361_v58 = vadd.f32 %v2311_v15, %v2083_v27 }
 0x29d   : > { %v2592_v45 = vpop.f32.mrf.mxu0 }
 0x29e   : > { %v2639_v47 = vadd.f32 %v2589_v20, %v2361_v58 }
 0x2a0   : > { %v2675_v49 = vadd.f32 %v4602_v12, %v2639_v47 }
 0x2a1   : > { %v2036_v3 = vpop.f32.mrf.mxu2 }
 0x2a2   : > { %2707 = vst [vmem:[%s4614_s11 + $0xb8] sm:$0xff] %v2675_v49  ;;  %v2738_v8 = vadd.f32 %v2737_v24, %v2675_v49  ;;  %v2777_v36 = vmul.f32 %v2675_v49, %v2675_v49  ;;  %v2084_v60 = vadd.f32 %v2036_v3, %v1805_v50  ;;  %v2314_v42 = vpop.f32.mrf.mxu3  ;;  %v1760_v7 = vpop.f32.mrf.mxu1 }
 0x2a3   : > { %v1806_v28 = vadd.f32 %v1760_v7, %v4519_v55 }
 0x2a4   : > { %v2808_v5 = vadd.f32 %v2807_v57, %v2777_v36  ;;  %v2362_v41 = vadd.f32 %v2314_v42, %v2084_v60 }
 0x2a5   : > { %v2595_v22 = vpop.f32.mrf.mxu0 }
 0x2a6   : > { %v2640_v34 = vadd.f32 %v2592_v45, %v2362_v41 }
 0x2a8   : > { %v2676_v53 = vadd.f32 %v4602_v12, %v2640_v34 }
 0x2a9   : > { %v2039_v26 = vpop.f32.mrf.mxu2 }
 0x2aa   : > { %2708 = vst [vmem:[%s4614_s11 + $0xc0] sm:$0xff] %v2676_v53  ;;  %v2739_v54 = vadd.f32 %v2738_v8, %v2676_v53  ;;  %v2778_v19 = vmul.f32 %v2676_v53, %v2676_v53  ;;  %v2085_v37 = vadd.f32 %v2039_v26, %v1806_v28  ;;  %v2317_v44 = vpop.f32.mrf.mxu3  ;;  %v1763_v33 = vpop.f32.mrf.mxu1 }
 0x2ab   : > { %v1807_v14 = vadd.f32 %v1763_v33, %v4530_v59 }
 0x2ac   : > { %v2809_v31 = vadd.f32 %v2808_v5, %v2778_v19  ;;  %v2363_v2 = vadd.f32 %v2317_v44, %v2085_v37 }
 0x2ad   : > { %v2598_v10 = vpop.f32.mrf.mxu0 }
 0x2ae   : > { %v2641_v18 = vadd.f32 %v2595_v22, %v2363_v2 }
 0x2b0   : > { %v2677_v40 = vadd.f32 %v4602_v12, %v2641_v18 }
 0x2b1   : > { %v2042_v55 = vpop.f32.mrf.mxu2 }
 0x2b2   : > { %2709 = vst [vmem:[%s4614_s11 + $0xc8] sm:$0xff] %v2677_v40  ;;  %v2740_v23 = vadd.f32 %v2739_v54, %v2677_v40  ;;  %v2779_v30 = vmul.f32 %v2677_v40, %v2677_v40  ;;  %v2086_v48 = vadd.f32 %v2042_v55, %v1807_v14  ;;  %v2320_v11 = vpop.f32.mrf.mxu3  ;;  %v1766_v63 = vpop.f32.mrf.mxu1 }
 0x2b3   : > { %v1808_v52 = vadd.f32 %v1766_v63, %v4541_v9 }
 0x2b4   : > { %v2810_v17 = vadd.f32 %v2809_v31, %v2779_v30  ;;  %v2364_v25 = vadd.f32 %v2320_v11, %v2086_v48 }
 0x2b5   : > { %v2601_v56 = vpop.f32.mrf.mxu0 }
 0x2b6   : > { %v2642_v1 = vadd.f32 %v2598_v10, %v2364_v25 }
 0x2b8   : > { %v2678_v43 = vadd.f32 %v4602_v12, %v2642_v1 }
 0x2b9   : > { %v2045_v59 = vpop.f32.mrf.mxu2 }
 0x2ba   : > { %2710 = vst [vmem:[%s4614_s11 + $0xd0] sm:$0xff] %v2678_v43  ;;  %v2741_v38 = vadd.f32 %v2740_v23, %v2678_v43  ;;  %v2780_v35 = vmul.f32 %v2678_v43, %v2678_v43  ;;  %v2087_v39 = vadd.f32 %v2045_v59, %v1808_v52  ;;  %v2323_v29 = vpop.f32.mrf.mxu3  ;;  %v1769_v51 = vpop.f32.mrf.mxu1 }
 0x2bb   : > { %v1809_v46 = vadd.f32 %v1769_v51, %v4552_v13 }
 0x2bc   : > { %v2811_v20 = vadd.f32 %v2810_v17, %v2780_v35  ;;  %v2365_v61 = vadd.f32 %v2323_v29, %v2087_v39 }
 0x2bd   : > { %v2604_v21 = vpop.f32.mrf.mxu0 }
 0x2be   : > { %v2643_v62 = vadd.f32 %v2601_v56, %v2365_v61 }
 0x2c0   : > { %v2679_v24 = vadd.f32 %v4602_v12, %v2643_v62 }
 0x2c1   : > { %v2048_v9 = vpop.f32.mrf.mxu2 }
 0x2c2   : > { %2711 = vst [vmem:[%s4614_s11 + $0xd8] sm:$0xff] %v2679_v24  ;;  %v2742_v6 = vadd.f32 %v2741_v38, %v2679_v24  ;;  %v2781_v27 = vmul.f32 %v2679_v24, %v2679_v24  ;;  %v2088_v15 = vadd.f32 %v2048_v9, %v1809_v46  ;;  %v2326_v32 = vpop.f32.mrf.mxu3  ;;  %v1772_v57 = vpop.f32.mrf.mxu1 }
 0x2c3   : > { %v1810_v49 = vadd.f32 %v1772_v57, %v4563_v4 }
 0x2c4   : > { %v2812_v58 = vadd.f32 %v2811_v20, %v2781_v27  ;;  %v2366_v45 = vadd.f32 %v2326_v32, %v2088_v15 }
 0x2c5   : > { %v2607_v50 = vpop.f32.mrf.mxu0 }
 0x2c6   : > { %v2644_v47 = vadd.f32 %v2604_v21, %v2366_v45 }
 0x2c8   : > { %v2680_v3 = vadd.f32 %v4602_v12, %v2644_v47 }
 0x2c9   : > { %v2051_v13 = vpop.f32.mrf.mxu2 }
 0x2ca   : > { %2712 = vst [vmem:[%s4614_s11 + $0xe0] sm:$0xff] %v2680_v3  ;;  %v2743_v8 = vadd.f32 %v2742_v6, %v2680_v3  ;;  %v2782_v36 = vmul.f32 %v2680_v3, %v2680_v3  ;;  %v2089_v60 = vadd.f32 %v2051_v13, %v1810_v49  ;;  %v2329_v42 = vpop.f32.mrf.mxu3  ;;  %v1775_v7 = vpop.f32.mrf.mxu1 }
 0x2cb   : > { %v1811_v34 = vadd.f32 %v1775_v7, %v4574_v16 }
 0x2cc   : > { %v2813_v5 = vadd.f32 %v2812_v58, %v2782_v36  ;;  %v2367_v41 = vadd.f32 %v2329_v42, %v2089_v60 }
 0x2cd   : > { %v2610_v4 = vpop.f32.mrf.mxu0 }
 0x2ce   : > { %v2645_v22 = vadd.f32 %v2607_v50, %v2367_v41 }
 0x2d0   : > { %v2681_v28 = vadd.f32 %v4602_v12, %v2645_v22 }
 0x2d1   : > { %v2054_v53 = vpop.f32.mrf.mxu2 }
 0x2d2   : > { %2713 = vst [vmem:[%s4614_s11 + $0xe8] sm:$0xff] %v2681_v28  ;;  %v2744_v26 = vadd.f32 %v2743_v8, %v2681_v28  ;;  %v2783_v54 = vmul.f32 %v2681_v28, %v2681_v28  ;;  %v2090_v19 = vadd.f32 %v2054_v53, %v1811_v34  ;;  %v2332_v37 = vpop.f32.mrf.mxu3  ;;  %v1778_v31 = vpop.f32.mrf.mxu1 }
 0x2d3   : > { %v1812_v10 = vadd.f32 %v1778_v31, %v4585_v0 }
 0x2d4   : > { %v2814_v44 = vadd.f32 %v2813_v5, %v2783_v54  ;;  %v2368_v33 = vadd.f32 %v2332_v37, %v2090_v19 }
 0x2d5   : > { %v2613_v30 = vpop.f32.mrf.mxu0 }
 0x2d6   : > { %v2646_v2 = vadd.f32 %v2610_v4, %v2368_v33 }
 0x2d8   : > { %v2682_v16 = vadd.f32 %v4602_v12, %v2646_v2 }
 0x2d9   : > { %v2057_v18 = vpop.f32.mrf.mxu2 }
 0x2da   : > { %2714 = vst [vmem:[%s4614_s11 + $0xf0] sm:$0xff] %v2682_v16  ;;  %v2745_v14 = vadd.f32 %v2744_v26, %v2682_v16  ;;  %v2784_v40 = vmul.f32 %v2682_v16, %v2682_v16  ;;  %v2091_v55 = vadd.f32 %v2057_v18, %v1812_v10  ;;  %v2335_v23 = vpop.f32.mrf.mxu3 }
 0x2dc   : > { %v2815_v48 = vadd.f32 %v2814_v44, %v2784_v40  ;;  %v2369_v11 = vadd.f32 %v2335_v23, %v2091_v55 }
 0x2de   : > { %v2647_v0 = vadd.f32 %v2613_v30, %v2369_v11 }
 0x2e0   : > { %v2683_v63 = vadd.f32 %v4602_v12, %v2647_v0 }
 0x2e2   : > { %2715 = vst [vmem:[%s4614_s11 + $0xf8] sm:$0xff] %v2683_v63  ;;  %v2746_v17 = vadd.f32 %v2745_v14, %v2683_v63  ;;  %v2785_v25 = vmul.f32 %v2683_v63, %v2683_v63 }
 0x2e3   : > { %3544 = shalt.err (!%p3541_p3)
}
 0x2e4   : > { %s3613_s10 = smov 128   ;;  %s3614_s11 = smov 8   ;;  %v2747_v12 = vrot.slane %v2746_v17, 4  ;;  %v2816_v56 = vadd.f32 %v2815_v48, %v2785_v25 }
 0x2e5   : > { %3470 = dma.vmem_to_hbm [thread:$0]  (%p3678_p5), %s2843_s22, 4096, %s2845_s23, %s2825_s27, %s3613_s10, %s3613_s10, %s3614_s11  }
 0x2e6   : > { %v2748_v1 = vadd.f32 %v2747_v12, %v2746_v17  ;;  %v2817_v52 = vrot.slane %v2816_v56, 4  ;;  %s2959_s12 = sshll.u32 %s4596_s7, 1  ;;  %s3462_s13 = sshll.u32 %s3661_s19, 1 }
 0x2e7   : > { %s2857_s28 = scalar_lea.hbm %s4886_s4, %s3462_s13  ;;  %s201_s29 = scalar_lea.vmem [#allocation4], %s2959_s12 }
 0x2e8   : > { %v2749_v43 = vrot.slane %v2748_v1, 2  ;;  %v2818_v59 = vadd.f32 %v2817_v52, %v2816_v56  ;;  %s2859_s22 = sshll.u32 %s201_s29, 4  ;;  %s2861_s23 = sshll.u32 %s2857_s28, 4  ;;  %s2860_s22 = int_to_ptr.vmem [resolvable:$true] %s2859_s22  ;;  %s2862_s23 = int_to_ptr.hbm [resolvable:$true] %s2861_s23 }
 0x2e9   : > { %s2830_s19 = scalar_lea.sflag [#allocation5], %s4596_s7  ;;  %s3559_s27 = sshra.s32 %s2862_s23, 4  ;;  %s3560_s27 = int_to_ptr.hbm [resolvable:$true] %s3559_s27 }
 0x2ea   : > { %v2750_v38 = vadd.f32 %v2749_v43, %v2748_v1  ;;  %v2819_v35 = vrot.slane %v2818_v59, 2  ;;  %s3561_s30 = scalar_lea.hbm %s3560_s27, 2  ;;  %s3565_s8 = scalar_lea.hbm %s4886_s4, 4 }
 0x2eb   : > { %p3562_p4 = scmp.ne.s32.totalorder %s3560_s27, %s3561_s30  ;;  %p3566_p9 = scmp.lt.s32.totalorder %s3560_s27, %s4886_s4 }
 0x2ec   : > { %v2751_v39 = vrot.slane %v2750_v38, 1  ;;  %v2820_v29 = vadd.f32 %v2819_v35, %v2818_v59  ;;  %p3567_p10 = scmp.lt.s32.totalorder %s3565_s8, %s3561_s30 }
 0x2ed   : > { %p3563_p7 = pnand %p3562_p4, %p3678_p5 }
 0x2ee   : > { %v2752_v51 = vadd.f32 %v2751_v39, %v2750_v38  ;;  %v2821_v20 = vrot.slane %v2820_v29, 1  ;;  %p3568_p11 = por %p3567_p10, %p3566_p9 }
 0x2ef   : > { %p3564_p8 = pneg %p3563_p7 }
 0x2f0   : > { %2753 = vst [vmem:[%s201_s29] sm:$0x1] %v2752_v51  ;;  %v2822_v61 = vadd.f32 %v2821_v20, %v2820_v29 }
 0x2f1   : > { %p3569_p12 = pnand %p3568_p11, %p3564_p8 }
 0x2f2   : > { %2823 = vst [vmem:[%s201_s29 + $0x1] sm:$0x1] %v2822_v61 }
 0x2f3   : > { %3572 = shalt.err (!%p3569_p12)
}
 0x2f4   : > { %3471 = dma.vmem_to_hbm [thread:$0]  (%p3678_p5), %s2860_s22, 32, %s2862_s23, %s2830_s19  }
 0x2f5 PF: > { %p3481_p13 = scmp.ge.s32.totalorder %s3611_s18, 2  ;;  %s2873_s7 = sand.u32 1, %s3599_s15  }
 0x2f6   : > { %s2874_s11 = scalar_lea.sflag [#allocation3], %s2873_s7 }
 0x2f7   : > { %p3475_p0 = pnand %p3481_p13, %p3682_p6 }
 0x2f9   : > { %p3476_p1 = pneg %p3475_p0 }
 0x2fb   : > { %3590 = dma.done.wait (%p3476_p1), %s2874_s11, 4096  }
 0x2fc   : > { %3592 = vsyncadd (%p3476_p1), %s2874_s11, 4294963200  ;;  %s2884_s12 = scalar_lea.sflag [#allocation5], %s2873_s7 }
 0x2fd   : > { %3594 = dma.done.wait (%p3476_p1), %s2884_s12, 32  }
 0x2fe   : > { %3596 = vsyncadd (%p3476_p1), %s2884_s12, 4294967264  ;;  %p18_p5 = scmp.ge.s32.totalorder %s3665_s21, 4   ;;  %s4993_s15 = smov %s3603_s16 }
 0x2ff   : > { %s4994_s16 = smov %s3607_s17  ;;  %s4995_s17 = smov %s3676_s24 }
 0x300   : > { %s4996_s18 = smov %s3665_s21  ;;  %20 = sbr.rel (!%p18_p5) target bundleno = 5 (0x5), region = 94 }
 0x305   :  { %2890 = vsyncpa [#allocation3], 1 }
 0x306   :  { %2892 = vsyncpa [#allocation3 + $0x1], 1 }
 0x307   :  { %2893 = vsyncpa [#allocation5], 1 }
 0x308   :  { %2895 = vsyncpa [#allocation5 + $0x1], 1 }

</bundles_post_ra>
